<compile_context>
chip_gen: v7x
topology: tpu7x:2x2x1
jax: 0.10.0
libtpu: 0.0.40
codegen_flags: <defaults>
</compile_context>

<pallas_src>
import functools
import math

import numpy as np
import jax
import jax.numpy as jnp
from jax.experimental import pallas as pl
from jax.experimental.pallas import tpu as pltpu

LRELU_SLOPE = 0.2


# ----------------------------------------------------------------------------
# Fused kernel: all coupling layers + final (permutation o exp(s)) matmul.
# ----------------------------------------------------------------------------
def nice_fused_kernel(x_ref, w_ref, b_ref, m_ref, out_ref, *, n_layers):
    u = x_ref[...]                                   # (bm, P) f32, stays resident
    for i in range(n_layers):
        h_bf16 = u.astype(jnp.bfloat16)              # MLP input (bf16 MXU path)
        h = None
        for j in range(6):
            k = 6 * i + j                            # static index into stacks
            h = jnp.dot(h_bf16, w_ref[k],
                        preferred_element_type=jnp.float32) + b_ref[k]
            if j < 5:
                h = jnp.maximum(h, LRELU_SLOPE * h)  # LeakyReLU(0.2)
                h_bf16 = h.astype(jnp.bfloat16)
        u = u + h                                    # additive coupling (scale=False)
    # Final AffineConstantFlow exp(s) scale + cumulative lane permutation were
    # folded on the host into the f32 matrix M; single MXU matmul, output is
    # already in the original dim order.
    out_ref[...] = jnp.dot(u, m_ref[...], preferred_element_type=jnp.float32)


# ----------------------------------------------------------------------------
# Host-side (numpy) parameter packing: fold permutations into zero-padded
# lane-dense weights and stack everything into 3 arrays.  One-time cost.
# ----------------------------------------------------------------------------
def _round_up(x, m):
    return ((x + m - 1) // m) * m


def pack_nice_params(layers, s):
    n_layers = len(layers)
    w0_np = np.asarray(layers[0][0][0])
    half, nh = w0_np.shape
    D = 2 * half
    P = max(_round_up(D, 128), _round_up(nh, 128), 128)

    # deinterleave permutation used by every AffineHalfFlow:  v -> [v_even, v_odd]
    deint = np.concatenate([np.arange(0, D, 2), np.arange(1, D, 2)])
    deint_inv = np.argsort(deint)

    w_stack = np.zeros((n_layers * 6, P, P), np.float32)
    b_stack = np.zeros((n_layers * 6, 1, P), np.float32)

    g = np.arange(D)                        # kernel basis: u = v[g]
    for i, layer in enumerate(layers):
        parity = i % 2
        ginv = np.argsort(g)
        half_sel = np.arange(1, D, 2) if parity else np.arange(0, D, 2)
        in_idx = ginv[half_sel]             # MLP input lanes, kernel basis
        g_next = deint_inv[g]
        ginv_next = np.argsort(g_next)
        pos = np.arange(half) if parity else np.arange(half) + half
        out_idx = ginv_next[pos]            # lanes receiving t, kernel basis

        w0, b0 = layer[0]
        w_stack[6 * i + 0][in_idx, :nh] = np.asarray(w0)
        b_stack[6 * i + 0][0, :nh] = np.asarray(b0).reshape(-1)
        for j in range(1, 5):
            w, b = layer[j]
            w_stack[6 * i + j][:nh, :nh] = np.asarray(w)
            b_stack[6 * i + j][0, :nh] = np.asarray(b).reshape(-1)
        w5, b5 = layer[5]
        w_stack[6 * i + 5][:nh, out_idx] = np.asarray(w5)
        b_stack[6 * i + 5][0, out_idx] = np.asarray(b5).reshape(-1)
        g = g_next

    ginv_final = np.argsort(g)
    s_np = np.asarray(s, np.float32).reshape(-1)
    m_mat = np.zeros((P, D), np.float32)
    m_mat[ginv_final, np.arange(D)] = np.exp(s_np)

    return dict(
        w=jnp.asarray(w_stack, jnp.bfloat16),
        b=jnp.asarray(b_stack, jnp.bfloat16),
        m=jnp.asarray(m_mat, jnp.float32),
        sum_s=jnp.float32(np.sum(s_np)),
        n_layers=n_layers, D=D, P=P)


# ----------------------------------------------------------------------------
# pallas_call wrapper
# ----------------------------------------------------------------------------
def nice_forward(x, packed, *, batch_tile=256):
    """Equivalent of NICE.forward(x, reverse=False)."""
    w_stack, b_stack, m_mat = packed["w"], packed["b"], packed["m"]
    n_layers, D, P = packed["n_layers"], packed["D"], packed["P"]
    B = x.shape[0]
    xf = x.reshape(B, -1).astype(jnp.float32)
    if P > D:
        xf = jnp.pad(xf, ((0, 0), (0, P - D)))

    kernel = functools.partial(nice_fused_kernel, n_layers=n_layers)
    L6 = w_stack.shape[0]

    if B <= batch_tile:
        # Small batch: single invocation, no grid -> one DMA per operand.
        z = pl.pallas_call(
            kernel,
            out_shape=jax.ShapeDtypeStruct((B, D), jnp.float32),
            in_specs=[pl.BlockSpec(memory_space=pltpu.MemorySpace.VMEM)] * 4,
            out_specs=pl.BlockSpec(memory_space=pltpu.MemorySpace.VMEM),
        )(xf, w_stack, b_stack, m_mat)
    else:
        # Large batch: tile batch over a parallel grid axis (fills the 256-wide
        # MXU M dimension; v7x's 2nd TensorCore picks up grid steps).  Constant
        # index_maps keep the weight stacks VMEM-resident across batch tiles.
        bm = batch_tile
        nb = -(-B // bm)
        Bp = nb * bm
        if Bp > B:
            xf = jnp.pad(xf, ((0, Bp - B), (0, 0)))
        z = pl.pallas_call(
            kernel,
            out_shape=jax.ShapeDtypeStruct((Bp, D), jnp.float32),
            grid=(nb,),
            in_specs=[
                pl.BlockSpec((bm, P), lambda i: (i, 0)),
                pl.BlockSpec((L6, P, P), lambda i: (0, 0, 0)),
                pl.BlockSpec((L6, 1, P), lambda i: (0, 0, 0)),
                pl.BlockSpec((P, D), lambda i: (0, 0)),
            ],
            out_specs=pl.BlockSpec((bm, D), lambda i: (i, 0)),
            compiler_params=pltpu.CompilerParams(
                dimension_semantics=("parallel",)),
        )(xf, w_stack, b_stack, m_mat)
        z = z[:B]

    log_det = jnp.broadcast_to(packed["sum_s"], (B,))  # coupling layers add 0
    return z, log_det


# ----------------------------------------------------------------------------
# Pure-JAX reference (faithful to the PyTorch module).  quantize=True mirrors
# the kernel's bf16 weight/activation numerics (f32 accumulate) exactly.
# ----------------------------------------------------------------------------
def _q(a):
    return a.astype(jnp.bfloat16).astype(jnp.float32)


def _mlp_ref(x, layer, quantize):
    h = x
    for j, (w, b) in enumerate(layer):
        if quantize:
            h_in, w, b = _q(h), _q(w), _q(b)
        else:
            h_in = h
        h = h_in @ w + b
        if j < 5:
            h = jnp.maximum(h, LRELU_SLOPE * h)
    return h


def nice_forward_ref(x, layers, s, quantize=False):
    B = x.shape[0]
    v = x.reshape(B, -1).astype(jnp.float32)
    for i, layer in enumerate(layers):
        parity = i % 2
        x0, x1 = v[:, ::2], v[:, 1::2]
        if parity:
            x0, x1 = x1, x0
        t = _mlp_ref(x0, layer, quantize)
        z0, z1 = x0, x1 + t
        if parity:
            z0, z1 = z1, z0
        v = jnp.concatenate([z0, z1], axis=1)
        # scale=False -> s_cond == 0 -> zero log_det contribution
    z = v * jnp.exp(s)
    log_det = jnp.broadcast_to(jnp.sum(s), (B,))
    return z, log_det


# ----------------------------------------------------------------------------
# Deterministic parameter init (MLP(nin=D/2, nout=D/2, nh=h_dim); weights
# stored as (in, out), i.e. transposed vs. torch's (out, in)).
# ----------------------------------------------------------------------------
def init_params(key, img_dim, h_dim, n_layers):
    half = img_dim // 2
    dims = [half] + [h_dim] * 5 + [half]
    layers = []
    for _ in range(n_layers):
        layer = []
        for j in range(6):
            key, kw, kb = jax.random.split(key, 3)
            bound = 1.0 / math.sqrt(dims[j])          # torch nn.Linear default
            w = jax.random.uniform(kw, (dims[j], dims[j + 1]), jnp.float32,
                                   -bound, bound)
            b = jax.random.uniform(kb, (1, dims[j + 1]), jnp.float32,
                                   -bound, bound)
            layer.append((w, b))
        layers.append(layer)
    key, ks = jax.random.split(key)
    s = jax.random.normal(ks, (1, img_dim), jnp.float32)  # AffineConstantFlow.s
    return layers, s


if __name__ == "__main__":
    # config.data.image_size=8, channels=2, model.n_layers=4, model.h_dim=32
    B, C, H, W = 8, 2, 8, 8
    img_dim = C * H * W            # 128 (already lane-dense)
    h_dim = 32
    n_layers = 4

    key = jax.random.PRNGKey(0)
    key, kx = jax.random.split(key)
    x = jax.random.normal(kx, (B, C, H, W), jnp.float32)

    layers, s = init_params(key, img_dim, h_dim, n_layers)
    packed = pack_nice_params(layers, s)      # host-side numpy, one-time

    # --- small batch: single gridless call ----------------------------------
    z, log_det = nice_forward(x, packed)
    jax.block_until_ready((z, log_det))

    z_ref, ld_ref = nice_forward_ref(x, layers, s, quantize=True)   # bf16-matched
    z_f32, _ = nice_forward_ref(x, layers, s, quantize=False)       # f32 module
    assert z.shape == (B, img_dim) and log_det.shape == (B,)
    assert jnp.allclose(z, z_ref, atol=5e-3, rtol=5e-3), \
        float(jnp.max(jnp.abs(z - z_ref)))
    assert jnp.allclose(log_det, ld_ref, atol=1e-3, rtol=1e-3)
    rel = jnp.linalg.norm(z - z_f32) / jnp.linalg.norm(z_f32)
    assert rel < 3e-2, float(rel)            # bf16-weight fidelity vs f32 module

    # --- large batch: batch-tiled parallel grid path -------------------------
    B2 = 512
    key, kx2 = jax.random.split(key)
    x2 = jax.random.normal(kx2, (B2, C, H, W), jnp.float32)
    z2, ld2 = nice_forward(x2, packed)
    jax.block_until_ready((z2, ld2))
    z2_ref, ld2_ref = nice_forward_ref(x2, layers, s, quantize=True)
    assert jnp.allclose(z2, z2_ref, atol=5e-3, rtol=5e-3), \
        float(jnp.max(jnp.abs(z2 - z2_ref)))
    assert jnp.allclose(ld2, ld2_ref, atol=1e-3, rtol=1e-3)

    print("KERNEL_OK")
</pallas_src>

<mosaic_0001>
module attributes {stable_mosaic.version = 11 : i64} {
  func.func @nice_fused_kernel(%arg0: memref<8x128xf32, #tpu.memory_space<vmem>>, %arg1: memref<24x128x128xbf16, #tpu.memory_space<vmem>>, %arg2: memref<24x1x128xbf16, #tpu.memory_space<vmem>>, %arg3: memref<128x128xf32, #tpu.memory_space<vmem>>, %arg4: memref<8x128xf32, #tpu.memory_space<vmem>>) attributes {dimension_semantics = [], scalar_prefetch = 0 : i64, scratch_operands = 0 : i64, tpu.core_type = #tpu.core_type<tc>} {
    %c0 = arith.constant 0 : index
    %c0_0 = arith.constant 0 : index
    %0 = vector.load %arg0[%c0, %c0_0] : memref<8x128xf32, #tpu.memory_space<vmem>>, vector<8x128xf32>
    %1 = arith.truncf %0 : vector<8x128xf32> to vector<8x128xbf16>
    %c0_1 = arith.constant 0 : index
    %c0_2 = arith.constant 0 : index
    %c0_3 = arith.constant 0 : index
    %2 = vector.load %arg1[%c0_1, %c0_2, %c0_3] : memref<24x128x128xbf16, #tpu.memory_space<vmem>>, vector<1x128x128xbf16>
    %3 = vector.shape_cast %2 : vector<1x128x128xbf16> to vector<128x128xbf16>
    %cst = arith.constant dense<0.000000e+00> : vector<8x128xf32>
    %4 = tpu.matmul %1, %3, %cst {dimension_numbers = #tpu.dot_dimension_numbers<[1], [0], [0], [1], [0, 0, 1, 1], [], []>} : vector<8x128xbf16>, vector<128x128xbf16>, vector<8x128xf32> -> vector<8x128xf32>
    %c0_4 = arith.constant 0 : index
    %c0_5 = arith.constant 0 : index
    %c0_6 = arith.constant 0 : index
    %5 = vector.load %arg2[%c0_4, %c0_5, %c0_6] : memref<24x1x128xbf16, #tpu.memory_space<vmem>>, vector<1x1x128xbf16>
    %6 = vector.shape_cast %5 : vector<1x1x128xbf16> to vector<1x128xbf16>
    %7 = arith.extf %6 : vector<1x128xbf16> to vector<1x128xf32>
    %8 = vector.broadcast %7 : vector<1x128xf32> to vector<8x128xf32>
    %9 = arith.addf %4, %8 : vector<8x128xf32>
    %cst_7 = arith.constant 2.000000e-01 : f32
    %10 = vector.broadcast %cst_7 : f32 to vector<8x128xf32>
    %11 = arith.mulf %10, %9 : vector<8x128xf32>
    %12 = arith.maximumf %9, %11 : vector<8x128xf32>
    %13 = arith.truncf %12 : vector<8x128xf32> to vector<8x128xbf16>
    %c1 = arith.constant 1 : index
    %c0_8 = arith.constant 0 : index
    %c0_9 = arith.constant 0 : index
    %14 = vector.load %arg1[%c1, %c0_8, %c0_9] : memref<24x128x128xbf16, #tpu.memory_space<vmem>>, vector<1x128x128xbf16>
    %15 = vector.shape_cast %14 : vector<1x128x128xbf16> to vector<128x128xbf16>
    %cst_10 = arith.constant dense<0.000000e+00> : vector<8x128xf32>
    %16 = tpu.matmul %13, %15, %cst_10 {dimension_numbers = #tpu.dot_dimension_numbers<[1], [0], [0], [1], [0, 0, 1, 1], [], []>} : vector<8x128xbf16>, vector<128x128xbf16>, vector<8x128xf32> -> vector<8x128xf32>
    %c1_11 = arith.constant 1 : index
    %c0_12 = arith.constant 0 : index
    %c0_13 = arith.constant 0 : index
    %17 = vector.load %arg2[%c1_11, %c0_12, %c0_13] : memref<24x1x128xbf16, #tpu.memory_space<vmem>>, vector<1x1x128xbf16>
    %18 = vector.shape_cast %17 : vector<1x1x128xbf16> to vector<1x128xbf16>
    %19 = arith.extf %18 : vector<1x128xbf16> to vector<1x128xf32>
    %20 = vector.broadcast %19 : vector<1x128xf32> to vector<8x128xf32>
    %21 = arith.addf %16, %20 : vector<8x128xf32>
    %cst_14 = arith.constant 2.000000e-01 : f32
    %22 = vector.broadcast %cst_14 : f32 to vector<8x128xf32>
    %23 = arith.mulf %22, %21 : vector<8x128xf32>
    %24 = arith.maximumf %21, %23 : vector<8x128xf32>
    %25 = arith.truncf %24 : vector<8x128xf32> to vector<8x128xbf16>
    %c2 = arith.constant 2 : index
    %c0_15 = arith.constant 0 : index
    %c0_16 = arith.constant 0 : index
    %26 = vector.load %arg1[%c2, %c0_15, %c0_16] : memref<24x128x128xbf16, #tpu.memory_space<vmem>>, vector<1x128x128xbf16>
    %27 = vector.shape_cast %26 : vector<1x128x128xbf16> to vector<128x128xbf16>
    %cst_17 = arith.constant dense<0.000000e+00> : vector<8x128xf32>
    %28 = tpu.matmul %25, %27, %cst_17 {dimension_numbers = #tpu.dot_dimension_numbers<[1], [0], [0], [1], [0, 0, 1, 1], [], []>} : vector<8x128xbf16>, vector<128x128xbf16>, vector<8x128xf32> -> vector<8x128xf32>
    %c2_18 = arith.constant 2 : index
    %c0_19 = arith.constant 0 : index
    %c0_20 = arith.constant 0 : index
    %29 = vector.load %arg2[%c2_18, %c0_19, %c0_20] : memref<24x1x128xbf16, #tpu.memory_space<vmem>>, vector<1x1x128xbf16>
    %30 = vector.shape_cast %29 : vector<1x1x128xbf16> to vector<1x128xbf16>
    %31 = arith.extf %30 : vector<1x128xbf16> to vector<1x128xf32>
    %32 = vector.broadcast %31 : vector<1x128xf32> to vector<8x128xf32>
    %33 = arith.addf %28, %32 : vector<8x128xf32>
    %cst_21 = arith.constant 2.000000e-01 : f32
    %34 = vector.broadcast %cst_21 : f32 to vector<8x128xf32>
    %35 = arith.mulf %34, %33 : vector<8x128xf32>
    %36 = arith.maximumf %33, %35 : vector<8x128xf32>
    %37 = arith.truncf %36 : vector<8x128xf32> to vector<8x128xbf16>
    %c3 = arith.constant 3 : index
    %c0_22 = arith.constant 0 : index
    %c0_23 = arith.constant 0 : index
    %38 = vector.load %arg1[%c3, %c0_22, %c0_23] : memref<24x128x128xbf16, #tpu.memory_space<vmem>>, vector<1x128x128xbf16>
    %39 = vector.shape_cast %38 : vector<1x128x128xbf16> to vector<128x128xbf16>
    %cst_24 = arith.constant dense<0.000000e+00> : vector<8x128xf32>
    %40 = tpu.matmul %37, %39, %cst_24 {dimension_numbers = #tpu.dot_dimension_numbers<[1], [0], [0], [1], [0, 0, 1, 1], [], []>} : vector<8x128xbf16>, vector<128x128xbf16>, vector<8x128xf32> -> vector<8x128xf32>
    %c3_25 = arith.constant 3 : index
    %c0_26 = arith.constant 0 : index
    %c0_27 = arith.constant 0 : index
    %41 = vector.load %arg2[%c3_25, %c0_26, %c0_27] : memref<24x1x128xbf16, #tpu.memory_space<vmem>>, vector<1x1x128xbf16>
    %42 = vector.shape_cast %41 : vector<1x1x128xbf16> to vector<1x128xbf16>
    %43 = arith.extf %42 : vector<1x128xbf16> to vector<1x128xf32>
    %44 = vector.broadcast %43 : vector<1x128xf32> to vector<8x128xf32>
    %45 = arith.addf %40, %44 : vector<8x128xf32>
    %cst_28 = arith.constant 2.000000e-01 : f32
    %46 = vector.broadcast %cst_28 : f32 to vector<8x128xf32>
    %47 = arith.mulf %46, %45 : vector<8x128xf32>
    %48 = arith.maximumf %45, %47 : vector<8x128xf32>
    %49 = arith.truncf %48 : vector<8x128xf32> to vector<8x128xbf16>
    %c4 = arith.constant 4 : index
    %c0_29 = arith.constant 0 : index
    %c0_30 = arith.constant 0 : index
    %50 = vector.load %arg1[%c4, %c0_29, %c0_30] : memref<24x128x128xbf16, #tpu.memory_space<vmem>>, vector<1x128x128xbf16>
    %51 = vector.shape_cast %50 : vector<1x128x128xbf16> to vector<128x128xbf16>
    %cst_31 = arith.constant dense<0.000000e+00> : vector<8x128xf32>
    %52 = tpu.matmul %49, %51, %cst_31 {dimension_numbers = #tpu.dot_dimension_numbers<[1], [0], [0], [1], [0, 0, 1, 1], [], []>} : vector<8x128xbf16>, vector<128x128xbf16>, vector<8x128xf32> -> vector<8x128xf32>
    %c4_32 = arith.constant 4 : index
    %c0_33 = arith.constant 0 : index
    %c0_34 = arith.constant 0 : index
    %53 = vector.load %arg2[%c4_32, %c0_33, %c0_34] : memref<24x1x128xbf16, #tpu.memory_space<vmem>>, vector<1x1x128xbf16>
    %54 = vector.shape_cast %53 : vector<1x1x128xbf16> to vector<1x128xbf16>
    %55 = arith.extf %54 : vector<1x128xbf16> to vector<1x128xf32>
    %56 = vector.broadcast %55 : vector<1x128xf32> to vector<8x128xf32>
    %57 = arith.addf %52, %56 : vector<8x128xf32>
    %cst_35 = arith.constant 2.000000e-01 : f32
    %58 = vector.broadcast %cst_35 : f32 to vector<8x128xf32>
    %59 = arith.mulf %58, %57 : vector<8x128xf32>
    %60 = arith.maximumf %57, %59 : vector<8x128xf32>
    %61 = arith.truncf %60 : vector<8x128xf32> to vector<8x128xbf16>
    %c5 = arith.constant 5 : index
    %c0_36 = arith.constant 0 : index
    %c0_37 = arith.constant 0 : index
    %62 = vector.load %arg1[%c5, %c0_36, %c0_37] : memref<24x128x128xbf16, #tpu.memory_space<vmem>>, vector<1x128x128xbf16>
    %63 = vector.shape_cast %62 : vector<1x128x128xbf16> to vector<128x128xbf16>
    %cst_38 = arith.constant dense<0.000000e+00> : vector<8x128xf32>
    %64 = tpu.matmul %61, %63, %cst_38 {dimension_numbers = #tpu.dot_dimension_numbers<[1], [0], [0], [1], [0, 0, 1, 1], [], []>} : vector<8x128xbf16>, vector<128x128xbf16>, vector<8x128xf32> -> vector<8x128xf32>
    %c5_39 = arith.constant 5 : index
    %c0_40 = arith.constant 0 : index
    %c0_41 = arith.constant 0 : index
    %65 = vector.load %arg2[%c5_39, %c0_40, %c0_41] : memref<24x1x128xbf16, #tpu.memory_space<vmem>>, vector<1x1x128xbf16>
    %66 = vector.shape_cast %65 : vector<1x1x128xbf16> to vector<1x128xbf16>
    %67 = arith.extf %66 : vector<1x128xbf16> to vector<1x128xf32>
    %68 = vector.broadcast %67 : vector<1x128xf32> to vector<8x128xf32>
    %69 = arith.addf %64, %68 : vector<8x128xf32>
    %70 = arith.addf %0, %69 : vector<8x128xf32>
    %71 = arith.truncf %70 : vector<8x128xf32> to vector<8x128xbf16>
    %c6 = arith.constant 6 : index
    %c0_42 = arith.constant 0 : index
    %c0_43 = arith.constant 0 : index
    %72 = vector.load %arg1[%c6, %c0_42, %c0_43] : memref<24x128x128xbf16, #tpu.memory_space<vmem>>, vector<1x128x128xbf16>
    %73 = vector.shape_cast %72 : vector<1x128x128xbf16> to vector<128x128xbf16>
    %cst_44 = arith.constant dense<0.000000e+00> : vector<8x128xf32>
    %74 = tpu.matmul %71, %73, %cst_44 {dimension_numbers = #tpu.dot_dimension_numbers<[1], [0], [0], [1], [0, 0, 1, 1], [], []>} : vector<8x128xbf16>, vector<128x128xbf16>, vector<8x128xf32> -> vector<8x128xf32>
    %c6_45 = arith.constant 6 : index
    %c0_46 = arith.constant 0 : index
    %c0_47 = arith.constant 0 : index
    %75 = vector.load %arg2[%c6_45, %c0_46, %c0_47] : memref<24x1x128xbf16, #tpu.memory_space<vmem>>, vector<1x1x128xbf16>
    %76 = vector.shape_cast %75 : vector<1x1x128xbf16> to vector<1x128xbf16>
    %77 = arith.extf %76 : vector<1x128xbf16> to vector<1x128xf32>
    %78 = vector.broadcast %77 : vector<1x128xf32> to vector<8x128xf32>
    %79 = arith.addf %74, %78 : vector<8x128xf32>
    %cst_48 = arith.constant 2.000000e-01 : f32
    %80 = vector.broadcast %cst_48 : f32 to vector<8x128xf32>
    %81 = arith.mulf %80, %79 : vector<8x128xf32>
    %82 = arith.maximumf %79, %81 : vector<8x128xf32>
    %83 = arith.truncf %82 : vector<8x128xf32> to vector<8x128xbf16>
    %c7 = arith.constant 7 : index
    %c0_49 = arith.constant 0 : index
    %c0_50 = arith.constant 0 : index
    %84 = vector.load %arg1[%c7, %c0_49, %c0_50] : memref<24x128x128xbf16, #tpu.memory_space<vmem>>, vector<1x128x128xbf16>
    %85 = vector.shape_cast %84 : vector<1x128x128xbf16> to vector<128x128xbf16>
    %cst_51 = arith.constant dense<0.000000e+00> : vector<8x128xf32>
    %86 = tpu.matmul %83, %85, %cst_51 {dimension_numbers = #tpu.dot_dimension_numbers<[1], [0], [0], [1], [0, 0, 1, 1], [], []>} : vector<8x128xbf16>, vector<128x128xbf16>, vector<8x128xf32> -> vector<8x128xf32>
    %c7_52 = arith.constant 7 : index
    %c0_53 = arith.constant 0 : index
    %c0_54 = arith.constant 0 : index
    %87 = vector.load %arg2[%c7_52, %c0_53, %c0_54] : memref<24x1x128xbf16, #tpu.memory_space<vmem>>, vector<1x1x128xbf16>
    %88 = vector.shape_cast %87 : vector<1x1x128xbf16> to vector<1x128xbf16>
    %89 = arith.extf %88 : vector<1x128xbf16> to vector<1x128xf32>
    %90 = vector.broadcast %89 : vector<1x128xf32> to vector<8x128xf32>
    %91 = arith.addf %86, %90 : vector<8x128xf32>
    %cst_55 = arith.constant 2.000000e-01 : f32
    %92 = vector.broadcast %cst_55 : f32 to vector<8x128xf32>
    %93 = arith.mulf %92, %91 : vector<8x128xf32>
    %94 = arith.maximumf %91, %93 : vector<8x128xf32>
    %95 = arith.truncf %94 : vector<8x128xf32> to vector<8x128xbf16>
    %c8 = arith.constant 8 : index
    %c0_56 = arith.constant 0 : index
    %c0_57 = arith.constant 0 : index
    %96 = vector.load %arg1[%c8, %c0_56, %c0_57] : memref<24x128x128xbf16, #tpu.memory_space<vmem>>, vector<1x128x128xbf16>
    %97 = vector.shape_cast %96 : vector<1x128x128xbf16> to vector<128x128xbf16>
    %cst_58 = arith.constant dense<0.000000e+00> : vector<8x128xf32>
    %98 = tpu.matmul %95, %97, %cst_58 {dimension_numbers = #tpu.dot_dimension_numbers<[1], [0], [0], [1], [0, 0, 1, 1], [], []>} : vector<8x128xbf16>, vector<128x128xbf16>, vector<8x128xf32> -> vector<8x128xf32>
    %c8_59 = arith.constant 8 : index
    %c0_60 = arith.constant 0 : index
    %c0_61 = arith.constant 0 : index
    %99 = vector.load %arg2[%c8_59, %c0_60, %c0_61] : memref<24x1x128xbf16, #tpu.memory_space<vmem>>, vector<1x1x128xbf16>
    %100 = vector.shape_cast %99 : vector<1x1x128xbf16> to vector<1x128xbf16>
    %101 = arith.extf %100 : vector<1x128xbf16> to vector<1x128xf32>
    %102 = vector.broadcast %101 : vector<1x128xf32> to vector<8x128xf32>
    %103 = arith.addf %98, %102 : vector<8x128xf32>
    %cst_62 = arith.constant 2.000000e-01 : f32
    %104 = vector.broadcast %cst_62 : f32 to vector<8x128xf32>
    %105 = arith.mulf %104, %103 : vector<8x128xf32>
    %106 = arith.maximumf %103, %105 : vector<8x128xf32>
    %107 = arith.truncf %106 : vector<8x128xf32> to vector<8x128xbf16>
    %c9 = arith.constant 9 : index
    %c0_63 = arith.constant 0 : index
    %c0_64 = arith.constant 0 : index
    %108 = vector.load %arg1[%c9, %c0_63, %c0_64] : memref<24x128x128xbf16, #tpu.memory_space<vmem>>, vector<1x128x128xbf16>
    %109 = vector.shape_cast %108 : vector<1x128x128xbf16> to vector<128x128xbf16>
    %cst_65 = arith.constant dense<0.000000e+00> : vector<8x128xf32>
    %110 = tpu.matmul %107, %109, %cst_65 {dimension_numbers = #tpu.dot_dimension_numbers<[1], [0], [0], [1], [0, 0, 1, 1], [], []>} : vector<8x128xbf16>, vector<128x128xbf16>, vector<8x128xf32> -> vector<8x128xf32>
    %c9_66 = arith.constant 9 : index
    %c0_67 = arith.constant 0 : index
    %c0_68 = arith.constant 0 : index
    %111 = vector.load %arg2[%c9_66, %c0_67, %c0_68] : memref<24x1x128xbf16, #tpu.memory_space<vmem>>, vector<1x1x128xbf16>
    %112 = vector.shape_cast %111 : vector<1x1x128xbf16> to vector<1x128xbf16>
    %113 = arith.extf %112 : vector<1x128xbf16> to vector<1x128xf32>
    %114 = vector.broadcast %113 : vector<1x128xf32> to vector<8x128xf32>
    %115 = arith.addf %110, %114 : vector<8x128xf32>
    %cst_69 = arith.constant 2.000000e-01 : f32
    %116 = vector.broadcast %cst_69 : f32 to vector<8x128xf32>
    %117 = arith.mulf %116, %115 : vector<8x128xf32>
    %118 = arith.maximumf %115, %117 : vector<8x128xf32>
    %119 = arith.truncf %118 : vector<8x128xf32> to vector<8x128xbf16>
    %c10 = arith.constant 10 : index
    %c0_70 = arith.constant 0 : index
    %c0_71 = arith.constant 0 : index
    %120 = vector.load %arg1[%c10, %c0_70, %c0_71] : memref<24x128x128xbf16, #tpu.memory_space<vmem>>, vector<1x128x128xbf16>
    %121 = vector.shape_cast %120 : vector<1x128x128xbf16> to vector<128x128xbf16>
    %cst_72 = arith.constant dense<0.000000e+00> : vector<8x128xf32>
    %122 = tpu.matmul %119, %121, %cst_72 {dimension_numbers = #tpu.dot_dimension_numbers<[1], [0], [0], [1], [0, 0, 1, 1], [], []>} : vector<8x128xbf16>, vector<128x128xbf16>, vector<8x128xf32> -> vector<8x128xf32>
    %c10_73 = arith.constant 10 : index
    %c0_74 = arith.constant 0 : index
    %c0_75 = arith.constant 0 : index
    %123 = vector.load %arg2[%c10_73, %c0_74, %c0_75] : memref<24x1x128xbf16, #tpu.memory_space<vmem>>, vector<1x1x128xbf16>
    %124 = vector.shape_cast %123 : vector<1x1x128xbf16> to vector<1x128xbf16>
    %125 = arith.extf %124 : vector<1x128xbf16> to vector<1x128xf32>
    %126 = vector.broadcast %125 : vector<1x128xf32> to vector<8x128xf32>
    %127 = arith.addf %122, %126 : vector<8x128xf32>
    %cst_76 = arith.constant 2.000000e-01 : f32
    %128 = vector.broadcast %cst_76 : f32 to vector<8x128xf32>
    %129 = arith.mulf %128, %127 : vector<8x128xf32>
    %130 = arith.maximumf %127, %129 : vector<8x128xf32>
    %131 = arith.truncf %130 : vector<8x128xf32> to vector<8x128xbf16>
    %c11 = arith.constant 11 : index
    %c0_77 = arith.constant 0 : index
    %c0_78 = arith.constant 0 : index
    %132 = vector.load %arg1[%c11, %c0_77, %c0_78] : memref<24x128x128xbf16, #tpu.memory_space<vmem>>, vector<1x128x128xbf16>
    %133 = vector.shape_cast %132 : vector<1x128x128xbf16> to vector<128x128xbf16>
    %cst_79 = arith.constant dense<0.000000e+00> : vector<8x128xf32>
    %134 = tpu.matmul %131, %133, %cst_79 {dimension_numbers = #tpu.dot_dimension_numbers<[1], [0], [0], [1], [0, 0, 1, 1], [], []>} : vector<8x128xbf16>, vector<128x128xbf16>, vector<8x128xf32> -> vector<8x128xf32>
    %c11_80 = arith.constant 11 : index
    %c0_81 = arith.constant 0 : index
    %c0_82 = arith.constant 0 : index
    %135 = vector.load %arg2[%c11_80, %c0_81, %c0_82] : memref<24x1x128xbf16, #tpu.memory_space<vmem>>, vector<1x1x128xbf16>
    %136 = vector.shape_cast %135 : vector<1x1x128xbf16> to vector<1x128xbf16>
    %137 = arith.extf %136 : vector<1x128xbf16> to vector<1x128xf32>
    %138 = vector.broadcast %137 : vector<1x128xf32> to vector<8x128xf32>
    %139 = arith.addf %134, %138 : vector<8x128xf32>
    %140 = arith.addf %70, %139 : vector<8x128xf32>
    %141 = arith.truncf %140 : vector<8x128xf32> to vector<8x128xbf16>
    %c12 = arith.constant 12 : index
    %c0_83 = arith.constant 0 : index
    %c0_84 = arith.constant 0 : index
    %142 = vector.load %arg1[%c12, %c0_83, %c0_84] : memref<24x128x128xbf16, #tpu.memory_space<vmem>>, vector<1x128x128xbf16>
    %143 = vector.shape_cast %142 : vector<1x128x128xbf16> to vector<128x128xbf16>
    %cst_85 = arith.constant dense<0.000000e+00> : vector<8x128xf32>
    %144 = tpu.matmul %141, %143, %cst_85 {dimension_numbers = #tpu.dot_dimension_numbers<[1], [0], [0], [1], [0, 0, 1, 1], [], []>} : vector<8x128xbf16>, vector<128x128xbf16>, vector<8x128xf32> -> vector<8x128xf32>
    %c12_86 = arith.constant 12 : index
    %c0_87 = arith.constant 0 : index
    %c0_88 = arith.constant 0 : index
    %145 = vector.load %arg2[%c12_86, %c0_87, %c0_88] : memref<24x1x128xbf16, #tpu.memory_space<vmem>>, vector<1x1x128xbf16>
    %146 = vector.shape_cast %145 : vector<1x1x128xbf16> to vector<1x128xbf16>
    %147 = arith.extf %146 : vector<1x128xbf16> to vector<1x128xf32>
    %148 = vector.broadcast %147 : vector<1x128xf32> to vector<8x128xf32>
    %149 = arith.addf %144, %148 : vector<8x128xf32>
    %cst_89 = arith.constant 2.000000e-01 : f32
    %150 = vector.broadcast %cst_89 : f32 to vector<8x128xf32>
    %151 = arith.mulf %150, %149 : vector<8x128xf32>
    %152 = arith.maximumf %149, %151 : vector<8x128xf32>
    %153 = arith.truncf %152 : vector<8x128xf32> to vector<8x128xbf16>
    %c13 = arith.constant 13 : index
    %c0_90 = arith.constant 0 : index
    %c0_91 = arith.constant 0 : index
    %154 = vector.load %arg1[%c13, %c0_90, %c0_91] : memref<24x128x128xbf16, #tpu.memory_space<vmem>>, vector<1x128x128xbf16>
    %155 = vector.shape_cast %154 : vector<1x128x128xbf16> to vector<128x128xbf16>
    %cst_92 = arith.constant dense<0.000000e+00> : vector<8x128xf32>
    %156 = tpu.matmul %153, %155, %cst_92 {dimension_numbers = #tpu.dot_dimension_numbers<[1], [0], [0], [1], [0, 0, 1, 1], [], []>} : vector<8x128xbf16>, vector<128x128xbf16>, vector<8x128xf32> -> vector<8x128xf32>
    %c13_93 = arith.constant 13 : index
    %c0_94 = arith.constant 0 : index
    %c0_95 = arith.constant 0 : index
    %157 = vector.load %arg2[%c13_93, %c0_94, %c0_95] : memref<24x1x128xbf16, #tpu.memory_space<vmem>>, vector<1x1x128xbf16>
    %158 = vector.shape_cast %157 : vector<1x1x128xbf16> to vector<1x128xbf16>
    %159 = arith.extf %158 : vector<1x128xbf16> to vector<1x128xf32>
    %160 = vector.broadcast %159 : vector<1x128xf32> to vector<8x128xf32>
    %161 = arith.addf %156, %160 : vector<8x128xf32>
    %cst_96 = arith.constant 2.000000e-01 : f32
    %162 = vector.broadcast %cst_96 : f32 to vector<8x128xf32>
    %163 = arith.mulf %162, %161 : vector<8x128xf32>
    %164 = arith.maximumf %161, %163 : vector<8x128xf32>
    %165 = arith.truncf %164 : vector<8x128xf32> to vector<8x128xbf16>
    %c14 = arith.constant 14 : index
    %c0_97 = arith.constant 0 : index
    %c0_98 = arith.constant 0 : index
    %166 = vector.load %arg1[%c14, %c0_97, %c0_98] : memref<24x128x128xbf16, #tpu.memory_space<vmem>>, vector<1x128x128xbf16>
    %167 = vector.shape_cast %166 : vector<1x128x128xbf16> to vector<128x128xbf16>
    %cst_99 = arith.constant dense<0.000000e+00> : vector<8x128xf32>
    %168 = tpu.matmul %165, %167, %cst_99 {dimension_numbers = #tpu.dot_dimension_numbers<[1], [0], [0], [1], [0, 0, 1, 1], [], []>} : vector<8x128xbf16>, vector<128x128xbf16>, vector<8x128xf32> -> vector<8x128xf32>
    %c14_100 = arith.constant 14 : index
    %c0_101 = arith.constant 0 : index
    %c0_102 = arith.constant 0 : index
    %169 = vector.load %arg2[%c14_100, %c0_101, %c0_102] : memref<24x1x128xbf16, #tpu.memory_space<vmem>>, vector<1x1x128xbf16>
    %170 = vector.shape_cast %169 : vector<1x1x128xbf16> to vector<1x128xbf16>
    %171 = arith.extf %170 : vector<1x128xbf16> to vector<1x128xf32>
    %172 = vector.broadcast %171 : vector<1x128xf32> to vector<8x128xf32>
    %173 = arith.addf %168, %172 : vector<8x128xf32>
    %cst_103 = arith.constant 2.000000e-01 : f32
    %174 = vector.broadcast %cst_103 : f32 to vector<8x128xf32>
    %175 = arith.mulf %174, %173 : vector<8x128xf32>
    %176 = arith.maximumf %173, %175 : vector<8x128xf32>
    %177 = arith.truncf %176 : vector<8x128xf32> to vector<8x128xbf16>
    %c15 = arith.constant 15 : index
    %c0_104 = arith.constant 0 : index
    %c0_105 = arith.constant 0 : index
    %178 = vector.load %arg1[%c15, %c0_104, %c0_105] : memref<24x128x128xbf16, #tpu.memory_space<vmem>>, vector<1x128x128xbf16>
    %179 = vector.shape_cast %178 : vector<1x128x128xbf16> to vector<128x128xbf16>
    %cst_106 = arith.constant dense<0.000000e+00> : vector<8x128xf32>
    %180 = tpu.matmul %177, %179, %cst_106 {dimension_numbers = #tpu.dot_dimension_numbers<[1], [0], [0], [1], [0, 0, 1, 1], [], []>} : vector<8x128xbf16>, vector<128x128xbf16>, vector<8x128xf32> -> vector<8x128xf32>
    %c15_107 = arith.constant 15 : index
    %c0_108 = arith.constant 0 : index
    %c0_109 = arith.constant 0 : index
    %181 = vector.load %arg2[%c15_107, %c0_108, %c0_109] : memref<24x1x128xbf16, #tpu.memory_space<vmem>>, vector<1x1x128xbf16>
    %182 = vector.shape_cast %181 : vector<1x1x128xbf16> to vector<1x128xbf16>
    %183 = arith.extf %182 : vector<1x128xbf16> to vector<1x128xf32>
    %184 = vector.broadcast %183 : vector<1x128xf32> to vector<8x128xf32>
    %185 = arith.addf %180, %184 : vector<8x128xf32>
    %cst_110 = arith.constant 2.000000e-01 : f32
    %186 = vector.broadcast %cst_110 : f32 to vector<8x128xf32>
    %187 = arith.mulf %186, %185 : vector<8x128xf32>
    %188 = arith.maximumf %185, %187 : vector<8x128xf32>
    %189 = arith.truncf %188 : vector<8x128xf32> to vector<8x128xbf16>
    %c16 = arith.constant 16 : index
    %c0_111 = arith.constant 0 : index
    %c0_112 = arith.constant 0 : index
    %190 = vector.load %arg1[%c16, %c0_111, %c0_112] : memref<24x128x128xbf16, #tpu.memory_space<vmem>>, vector<1x128x128xbf16>
    %191 = vector.shape_cast %190 : vector<1x128x128xbf16> to vector<128x128xbf16>
    %cst_113 = arith.constant dense<0.000000e+00> : vector<8x128xf32>
    %192 = tpu.matmul %189, %191, %cst_113 {dimension_numbers = #tpu.dot_dimension_numbers<[1], [0], [0], [1], [0, 0, 1, 1], [], []>} : vector<8x128xbf16>, vector<128x128xbf16>, vector<8x128xf32> -> vector<8x128xf32>
    %c16_114 = arith.constant 16 : index
    %c0_115 = arith.constant 0 : index
    %c0_116 = arith.constant 0 : index
    %193 = vector.load %arg2[%c16_114, %c0_115, %c0_116] : memref<24x1x128xbf16, #tpu.memory_space<vmem>>, vector<1x1x128xbf16>
    %194 = vector.shape_cast %193 : vector<1x1x128xbf16> to vector<1x128xbf16>
    %195 = arith.extf %194 : vector<1x128xbf16> to vector<1x128xf32>
    %196 = vector.broadcast %195 : vector<1x128xf32> to vector<8x128xf32>
    %197 = arith.addf %192, %196 : vector<8x128xf32>
    %cst_117 = arith.constant 2.000000e-01 : f32
    %198 = vector.broadcast %cst_117 : f32 to vector<8x128xf32>
    %199 = arith.mulf %198, %197 : vector<8x128xf32>
    %200 = arith.maximumf %197, %199 : vector<8x128xf32>
    %201 = arith.truncf %200 : vector<8x128xf32> to vector<8x128xbf16>
    %c17 = arith.constant 17 : index
    %c0_118 = arith.constant 0 : index
    %c0_119 = arith.constant 0 : index
    %202 = vector.load %arg1[%c17, %c0_118, %c0_119] : memref<24x128x128xbf16, #tpu.memory_space<vmem>>, vector<1x128x128xbf16>
    %203 = vector.shape_cast %202 : vector<1x128x128xbf16> to vector<128x128xbf16>
    %cst_120 = arith.constant dense<0.000000e+00> : vector<8x128xf32>
    %204 = tpu.matmul %201, %203, %cst_120 {dimension_numbers = #tpu.dot_dimension_numbers<[1], [0], [0], [1], [0, 0, 1, 1], [], []>} : vector<8x128xbf16>, vector<128x128xbf16>, vector<8x128xf32> -> vector<8x128xf32>
    %c17_121 = arith.constant 17 : index
    %c0_122 = arith.constant 0 : index
    %c0_123 = arith.constant 0 : index
    %205 = vector.load %arg2[%c17_121, %c0_122, %c0_123] : memref<24x1x128xbf16, #tpu.memory_space<vmem>>, vector<1x1x128xbf16>
    %206 = vector.shape_cast %205 : vector<1x1x128xbf16> to vector<1x128xbf16>
    %207 = arith.extf %206 : vector<1x128xbf16> to vector<1x128xf32>
    %208 = vector.broadcast %207 : vector<1x128xf32> to vector<8x128xf32>
    %209 = arith.addf %204, %208 : vector<8x128xf32>
    %210 = arith.addf %140, %209 : vector<8x128xf32>
    %211 = arith.truncf %210 : vector<8x128xf32> to vector<8x128xbf16>
    %c18 = arith.constant 18 : index
    %c0_124 = arith.constant 0 : index
    %c0_125 = arith.constant 0 : index
    %212 = vector.load %arg1[%c18, %c0_124, %c0_125] : memref<24x128x128xbf16, #tpu.memory_space<vmem>>, vector<1x128x128xbf16>
    %213 = vector.shape_cast %212 : vector<1x128x128xbf16> to vector<128x128xbf16>
    %cst_126 = arith.constant dense<0.000000e+00> : vector<8x128xf32>
    %214 = tpu.matmul %211, %213, %cst_126 {dimension_numbers = #tpu.dot_dimension_numbers<[1], [0], [0], [1], [0, 0, 1, 1], [], []>} : vector<8x128xbf16>, vector<128x128xbf16>, vector<8x128xf32> -> vector<8x128xf32>
    %c18_127 = arith.constant 18 : index
    %c0_128 = arith.constant 0 : index
    %c0_129 = arith.constant 0 : index
    %215 = vector.load %arg2[%c18_127, %c0_128, %c0_129] : memref<24x1x128xbf16, #tpu.memory_space<vmem>>, vector<1x1x128xbf16>
    %216 = vector.shape_cast %215 : vector<1x1x128xbf16> to vector<1x128xbf16>
    %217 = arith.extf %216 : vector<1x128xbf16> to vector<1x128xf32>
    %218 = vector.broadcast %217 : vector<1x128xf32> to vector<8x128xf32>
    %219 = arith.addf %214, %218 : vector<8x128xf32>
    %cst_130 = arith.constant 2.000000e-01 : f32
    %220 = vector.broadcast %cst_130 : f32 to vector<8x128xf32>
    %221 = arith.mulf %220, %219 : vector<8x128xf32>
    %222 = arith.maximumf %219, %221 : vector<8x128xf32>
    %223 = arith.truncf %222 : vector<8x128xf32> to vector<8x128xbf16>
    %c19 = arith.constant 19 : index
    %c0_131 = arith.constant 0 : index
    %c0_132 = arith.constant 0 : index
    %224 = vector.load %arg1[%c19, %c0_131, %c0_132] : memref<24x128x128xbf16, #tpu.memory_space<vmem>>, vector<1x128x128xbf16>
    %225 = vector.shape_cast %224 : vector<1x128x128xbf16> to vector<128x128xbf16>
    %cst_133 = arith.constant dense<0.000000e+00> : vector<8x128xf32>
    %226 = tpu.matmul %223, %225, %cst_133 {dimension_numbers = #tpu.dot_dimension_numbers<[1], [0], [0], [1], [0, 0, 1, 1], [], []>} : vector<8x128xbf16>, vector<128x128xbf16>, vector<8x128xf32> -> vector<8x128xf32>
    %c19_134 = arith.constant 19 : index
    %c0_135 = arith.constant 0 : index
    %c0_136 = arith.constant 0 : index
    %227 = vector.load %arg2[%c19_134, %c0_135, %c0_136] : memref<24x1x128xbf16, #tpu.memory_space<vmem>>, vector<1x1x128xbf16>
    %228 = vector.shape_cast %227 : vector<1x1x128xbf16> to vector<1x128xbf16>
    %229 = arith.extf %228 : vector<1x128xbf16> to vector<1x128xf32>
    %230 = vector.broadcast %229 : vector<1x128xf32> to vector<8x128xf32>
    %231 = arith.addf %226, %230 : vector<8x128xf32>
    %cst_137 = arith.constant 2.000000e-01 : f32
    %232 = vector.broadcast %cst_137 : f32 to vector<8x128xf32>
    %233 = arith.mulf %232, %231 : vector<8x128xf32>
    %234 = arith.maximumf %231, %233 : vector<8x128xf32>
    %235 = arith.truncf %234 : vector<8x128xf32> to vector<8x128xbf16>
    %c20 = arith.constant 20 : index
    %c0_138 = arith.constant 0 : index
    %c0_139 = arith.constant 0 : index
    %236 = vector.load %arg1[%c20, %c0_138, %c0_139] : memref<24x128x128xbf16, #tpu.memory_space<vmem>>, vector<1x128x128xbf16>
    %237 = vector.shape_cast %236 : vector<1x128x128xbf16> to vector<128x128xbf16>
    %cst_140 = arith.constant dense<0.000000e+00> : vector<8x128xf32>
    %238 = tpu.matmul %235, %237, %cst_140 {dimension_numbers = #tpu.dot_dimension_numbers<[1], [0], [0], [1], [0, 0, 1, 1], [], []>} : vector<8x128xbf16>, vector<128x128xbf16>, vector<8x128xf32> -> vector<8x128xf32>
    %c20_141 = arith.constant 20 : index
    %c0_142 = arith.constant 0 : index
    %c0_143 = arith.constant 0 : index
    %239 = vector.load %arg2[%c20_141, %c0_142, %c0_143] : memref<24x1x128xbf16, #tpu.memory_space<vmem>>, vector<1x1x128xbf16>
    %240 = vector.shape_cast %239 : vector<1x1x128xbf16> to vector<1x128xbf16>
    %241 = arith.extf %240 : vector<1x128xbf16> to vector<1x128xf32>
    %242 = vector.broadcast %241 : vector<1x128xf32> to vector<8x128xf32>
    %243 = arith.addf %238, %242 : vector<8x128xf32>
    %cst_144 = arith.constant 2.000000e-01 : f32
    %244 = vector.broadcast %cst_144 : f32 to vector<8x128xf32>
    %245 = arith.mulf %244, %243 : vector<8x128xf32>
    %246 = arith.maximumf %243, %245 : vector<8x128xf32>
    %247 = arith.truncf %246 : vector<8x128xf32> to vector<8x128xbf16>
    %c21 = arith.constant 21 : index
    %c0_145 = arith.constant 0 : index
    %c0_146 = arith.constant 0 : index
    %248 = vector.load %arg1[%c21, %c0_145, %c0_146] : memref<24x128x128xbf16, #tpu.memory_space<vmem>>, vector<1x128x128xbf16>
    %249 = vector.shape_cast %248 : vector<1x128x128xbf16> to vector<128x128xbf16>
    %cst_147 = arith.constant dense<0.000000e+00> : vector<8x128xf32>
    %250 = tpu.matmul %247, %249, %cst_147 {dimension_numbers = #tpu.dot_dimension_numbers<[1], [0], [0], [1], [0, 0, 1, 1], [], []>} : vector<8x128xbf16>, vector<128x128xbf16>, vector<8x128xf32> -> vector<8x128xf32>
    %c21_148 = arith.constant 21 : index
    %c0_149 = arith.constant 0 : index
    %c0_150 = arith.constant 0 : index
    %251 = vector.load %arg2[%c21_148, %c0_149, %c0_150] : memref<24x1x128xbf16, #tpu.memory_space<vmem>>, vector<1x1x128xbf16>
    %252 = vector.shape_cast %251 : vector<1x1x128xbf16> to vector<1x128xbf16>
    %253 = arith.extf %252 : vector<1x128xbf16> to vector<1x128xf32>
    %254 = vector.broadcast %253 : vector<1x128xf32> to vector<8x128xf32>
    %255 = arith.addf %250, %254 : vector<8x128xf32>
    %cst_151 = arith.constant 2.000000e-01 : f32
    %256 = vector.broadcast %cst_151 : f32 to vector<8x128xf32>
    %257 = arith.mulf %256, %255 : vector<8x128xf32>
    %258 = arith.maximumf %255, %257 : vector<8x128xf32>
    %259 = arith.truncf %258 : vector<8x128xf32> to vector<8x128xbf16>
    %c22 = arith.constant 22 : index
    %c0_152 = arith.constant 0 : index
    %c0_153 = arith.constant 0 : index
    %260 = vector.load %arg1[%c22, %c0_152, %c0_153] : memref<24x128x128xbf16, #tpu.memory_space<vmem>>, vector<1x128x128xbf16>
    %261 = vector.shape_cast %260 : vector<1x128x128xbf16> to vector<128x128xbf16>
    %cst_154 = arith.constant dense<0.000000e+00> : vector<8x128xf32>
    %262 = tpu.matmul %259, %261, %cst_154 {dimension_numbers = #tpu.dot_dimension_numbers<[1], [0], [0], [1], [0, 0, 1, 1], [], []>} : vector<8x128xbf16>, vector<128x128xbf16>, vector<8x128xf32> -> vector<8x128xf32>
    %c22_155 = arith.constant 22 : index
    %c0_156 = arith.constant 0 : index
    %c0_157 = arith.constant 0 : index
    %263 = vector.load %arg2[%c22_155, %c0_156, %c0_157] : memref<24x1x128xbf16, #tpu.memory_space<vmem>>, vector<1x1x128xbf16>
    %264 = vector.shape_cast %263 : vector<1x1x128xbf16> to vector<1x128xbf16>
    %265 = arith.extf %264 : vector<1x128xbf16> to vector<1x128xf32>
    %266 = vector.broadcast %265 : vector<1x128xf32> to vector<8x128xf32>
    %267 = arith.addf %262, %266 : vector<8x128xf32>
    %cst_158 = arith.constant 2.000000e-01 : f32
    %268 = vector.broadcast %cst_158 : f32 to vector<8x128xf32>
    %269 = arith.mulf %268, %267 : vector<8x128xf32>
    %270 = arith.maximumf %267, %269 : vector<8x128xf32>
    %271 = arith.truncf %270 : vector<8x128xf32> to vector<8x128xbf16>
    %c23 = arith.constant 23 : index
    %c0_159 = arith.constant 0 : index
    %c0_160 = arith.constant 0 : index
    %272 = vector.load %arg1[%c23, %c0_159, %c0_160] : memref<24x128x128xbf16, #tpu.memory_space<vmem>>, vector<1x128x128xbf16>
    %273 = vector.shape_cast %272 : vector<1x128x128xbf16> to vector<128x128xbf16>
    %cst_161 = arith.constant dense<0.000000e+00> : vector<8x128xf32>
    %274 = tpu.matmul %271, %273, %cst_161 {dimension_numbers = #tpu.dot_dimension_numbers<[1], [0], [0], [1], [0, 0, 1, 1], [], []>} : vector<8x128xbf16>, vector<128x128xbf16>, vector<8x128xf32> -> vector<8x128xf32>
    %c23_162 = arith.constant 23 : index
    %c0_163 = arith.constant 0 : index
    %c0_164 = arith.constant 0 : index
    %275 = vector.load %arg2[%c23_162, %c0_163, %c0_164] : memref<24x1x128xbf16, #tpu.memory_space<vmem>>, vector<1x1x128xbf16>
    %276 = vector.shape_cast %275 : vector<1x1x128xbf16> to vector<1x128xbf16>
    %277 = arith.extf %276 : vector<1x128xbf16> to vector<1x128xf32>
    %278 = vector.broadcast %277 : vector<1x128xf32> to vector<8x128xf32>
    %279 = arith.addf %274, %278 : vector<8x128xf32>
    %280 = arith.addf %210, %279 : vector<8x128xf32>
    %c0_165 = arith.constant 0 : index
    %c0_166 = arith.constant 0 : index
    %281 = vector.load %arg3[%c0_165, %c0_166] : memref<128x128xf32, #tpu.memory_space<vmem>>, vector<128x128xf32>
    %cst_167 = arith.constant dense<0.000000e+00> : vector<8x128xf32>
    %282 = tpu.matmul %280, %281, %cst_167 {dimension_numbers = #tpu.dot_dimension_numbers<[1], [0], [0], [1], [0, 0, 1, 1], [], []>} : vector<8x128xf32>, vector<128x128xf32>, vector<8x128xf32> -> vector<8x128xf32>
    %c0_168 = arith.constant 0 : index
    %c0_169 = arith.constant 0 : index
    %283 = vector.load %arg4[%c0_168, %c0_169] : memref<8x128xf32, #tpu.memory_space<vmem>>, vector<8x128xf32>
    tpu.vector_store %arg4[%c0_168, %c0_169], %282 {strides = array<i32>} : memref<8x128xf32, #tpu.memory_space<vmem>>, vector<8x128xf32>,
    return
  }
}

</mosaic_0001>

<bundles_post_ra>
// kernel: tpu_custom_call.1
= control target key start
LH: loop header
LB: loop body
LE: loop exit
PB: predicated region body
PF: predicated region fallthrough
CT: control target
= control target key end

     0   :  { %9 = vsyncpa [#allocation3], 0  ;;  %s4599_s0 = inlined_call_operand.vmem [shape: f32[8,128], index: 0, kind: input, shape index: {}]   ;;  %s4600_s1 = inlined_call_operand.hbm [shape: bf16[24,128,128], index: 1, kind: input, shape index: {}]   ;;  %s4601_s2 = inlined_call_operand.vmem [shape: bf16[24,1,128], index: 2, kind: input, shape index: {}]   ;;  %s4602_s3 = inlined_call_operand.hbm [shape: f32[128,128], index: 3, kind: input, shape index: {}]   ;;  %s4603_s4 = inlined_call_operand.hbm [shape: f32[8,128], index: 4, kind: output, shape index: {}]  }
   0x1   :  { %10 = vsyncpa [#allocation6], 0 }
   0x2   :  { %11 = vsyncpa [#allocation4], 0  ;;  %s4167_s15 = smov [#allocation2]   ;;  %s4095_s19 = scalar_lea.hbm %s4600_s1, 24576 }
   0x3   :  { %s19_s16 = sshll.u32 %s4167_s15, 4  ;;  %p4096_p0 = scmp.ne.s32.totalorder %s4600_s1, %s4095_s19  ;;  %s20_s16 = int_to_ptr.vmem [resolvable:$true] %s19_s16 }
   0x4   :  { %p4099_p1 = scmp.lt.u32.totalorder %s4095_s19, %s4600_s1 }
   0x6   :  { %p4101_p2 = pnand %p4099_p1, %p4096_p0 }
   0x8   :  { %4104 = shalt.err (!%p4101_p2)
}
   0x9   :  { %s4105_s24 = scalar_lea.vmem %s20_s16, 24576  ;;  %p4110_p4 = scmp.lt.s32.totalorder %s20_s16, %s20_s16 }
   0xa   :  { %p4106_p3 = scmp.ne.s32.totalorder %s20_s16, %s4105_s24  ;;  %p4111_p5 = scmp.lt.s32.totalorder %s4105_s24, %s4105_s24 }
   0xc   :  { %p4112_p6 = por %p4111_p5, %p4110_p4 }
   0xe   :  { %p4113_p7 = pnand %p4112_p6, %p4106_p3 }
  0x10   :  { %4116 = shalt.err (!%p4113_p7)
}
  0x11   :  { %s4168_s25 = smov 64   ;;  %s4169_s26 = smov 4  }
  0x12   :  { %25 = dma.hbm_to_vmem [thread:$0]  %s4600_s1, 24576, %s20_s16, [#allocation3], %s4168_s25, %s4168_s25, %s4169_s26  }
  0x13   :  { %s4170_s29 = smov [#allocation5]   ;;  %s4117_s7 = scalar_lea.hbm %s4602_s3, 2048 }
  0x14   :  { %s33_s30 = sshll.u32 %s4170_s29, 4  ;;  %p4118_p8 = scmp.ne.s32.totalorder %s4602_s3, %s4117_s7  ;;  %s34_s30 = int_to_ptr.vmem [resolvable:$true] %s33_s30 }
  0x15   :  { %p4121_p9 = scmp.lt.u32.totalorder %s4117_s7, %s4602_s3 }
  0x17   :  { %p4123_p10 = pnand %p4121_p9, %p4118_p8 }
  0x19   :  { %4126 = shalt.err (!%p4123_p10)
}
  0x1a   :  { %s4127_s12 = scalar_lea.vmem %s34_s30, 2048  ;;  %p4132_p12 = scmp.lt.s32.totalorder %s34_s30, %s34_s30 }
  0x1b   :  { %p4128_p11 = scmp.ne.s32.totalorder %s34_s30, %s4127_s12  ;;  %p4133_p13 = scmp.lt.s32.totalorder %s4127_s12, %s4127_s12 }
  0x1d   :  { %p4134_p0 = por %p4133_p13, %p4132_p12 }
  0x1f   :  { %p4135_p1 = pnand %p4134_p0, %p4128_p11 }
  0x21   :  { %4138 = shalt.err (!%p4135_p1)
}
  0x22   :  { %s4171_s1 = smov 128   ;;  %s4172_s13 = smov 8  }
  0x23   :  { %39 = dma.hbm_to_vmem [thread:$0]  %s4602_s3, 2048, %s34_s30, [#allocation6], %s4171_s1, %s4171_s1, %s4172_s13  }
  0x24   :  { %4161 = dma.done.wait [#allocation3], 24576  }
  0x25   :  { %4162 = vsyncadd [#allocation3], 4294942720 }
  0x26   :  { %4163 = dma.done.wait [#allocation6], 2048  }
  0x27   :  { %4164 = vsyncadd [#allocation6], 4294965248  ;;  %v4173_v0 = vmov 0.0   ;;  %vm4174_vm0 = vmmov 0   ;;  %v3902_v1 = vld [vmem:[#allocation2] sm:$0xff]   ;;  %v3903_v2 = vld [vmem:[#allocation2 + $0x8] sm:$0xff]   ;;  %v67_v25 = vlaneseq }
  0x28   :  { %3353 = vmatprep.subr.bf16.mxu0 %v4173_v0  ;;  %3369 = vmatprep.mubr.msk.bf16.mxu0 %vm4174_vm0, %v4173_v0  ;;  %v3904_v3 = vld [vmem:[#allocation2 + $0x10] sm:$0xff]   ;;  %v3910_v4 = vld [vmem:[#allocation2 + $0x40] sm:$0xff]   ;;  %v3905_v5 = vld [vmem:[#allocation2 + $0x18] sm:$0xff]   ;;  %s4176_s11 = smov [#allocation7]  }
  0x29   :  { %3373 = vmatprep.subr.bf16.mxu1 %v4173_v0  ;;  %3389 = vmatprep.mubr.msk.bf16.mxu1 %vm4174_vm0, %v4173_v0  ;;  %v3911_v6 = vld [vmem:[#allocation2 + $0x48] sm:$0xff]   ;;  %v3906_v7 = vld [vmem:[#allocation2 + $0x20] sm:$0xff]   ;;  %v3912_v8 = vld [vmem:[#allocation2 + $0x50] sm:$0xff]   ;;  %v68_v26 = vshrl.u32 %v67_v25, 7  ;;  %s2895_s12 = sshll.u32 %s4176_s11, 4  ;;  %s2896_s12 = int_to_ptr.vmem [resolvable:$true] %s2895_s12 }
  0x2a   :  { %3354 = vmatpush3.bf16.msra.mxu0 %v3902_v1  ;;  %3374 = vmatpush3.bf16.msra.mxu1 %v3910_v4  ;;  %v3907_v9 = vld [vmem:[#allocation2 + $0x28] sm:$0xff]   ;;  %v3913_v10 = vld [vmem:[#allocation2 + $0x58] sm:$0xff]   ;;  %v3908_v11 = vld [vmem:[#allocation2 + $0x30] sm:$0xff]   ;;  %s4139_s1 = scalar_lea.vmem %s2896_s12, 128  ;;  %p4144_p3 = scmp.lt.s32.totalorder %s2896_s12, %s2896_s12 }
  0x2b   :  { %3355 = vmatprep.subr.bf16.mxu0 %v4173_v0  ;;  %3375 = vmatprep.subr.bf16.mxu1 %v4173_v0  ;;  %v3914_v12 = vld [vmem:[#allocation2 + $0x60] sm:$0xff]   ;;  %v3909_v13 = vld [vmem:[#allocation2 + $0x38] sm:$0xff]   ;;  %v3915_v15 = vld [vmem:[#allocation2 + $0x68] sm:$0xff]   ;;  %v4262_v29 = vsub.s32 0, %v68_v26  ;;  %p4140_p2 = scmp.ne.s32.totalorder %s2896_s12, %s4139_s1  ;;  %p4145_p4 = scmp.lt.s32.totalorder %s4139_s1, %s4139_s1 }
  0x2c   :  { %v47_v14 = vld [vmem:[%s4599_s0] sm:$0xff]  ;;  %v3916_v17 = vld [vmem:[#allocation2 + $0x70] sm:$0xff]   ;;  %v3917_v18 = vld [vmem:[#allocation2 + $0x78] sm:$0xff]  }
  0x2d   :  { %v48_v16 = vpack.c.bf16 %v47_v14, %v47_v14  ;;  %v3918_v19 = vld [vmem:[#allocation2 + $0x80] sm:$0xff]   ;;  %v3919_v20 = vld [vmem:[#allocation2 + $0x88] sm:$0xff]   ;;  %v3920_v21 = vld [vmem:[#allocation2 + $0x90] sm:$0xff]   ;;  %p4146_p5 = por %p4145_p4, %p4144_p3 }
  0x2e   :  { %3356 = vmatpush3.bf16.msra.mxu0 %v3903_v2  ;;  %3376 = vmatpush3.bf16.msra.mxu1 %v3911_v6  ;;  %v3921_v22 = vld [vmem:[#allocation2 + $0x98] sm:$0xff]   ;;  %v3922_v23 = vld [vmem:[#allocation2 + $0xa0] sm:$0xff]   ;;  %v3923_v24 = vld [vmem:[#allocation2 + $0xa8] sm:$0xff]  }
  0x2f   :  { %3357 = vmatprep.subr.bf16.mxu0 %v4173_v0  ;;  %3377 = vmatprep.subr.bf16.mxu1 %v4173_v0  ;;  %v65_v27 = vld [vmem:[%s4601_s2] sm:$0x1]  ;;  %v3924_v39 = vld [vmem:[#allocation2 + $0xb0] sm:$0xff]   ;;  %v3925_v40 = vld [vmem:[#allocation2 + $0xb8] sm:$0xff]   ;;  %p4147_p6 = pnand %p4146_p5, %p4140_p2 }
  0x30   :  { %v66_v28 = vunpack.c.l.bf16 %v65_v27  ;;  %v3926_v41 = vld [vmem:[#allocation2 + $0xc0] sm:$0xff]   ;;  %v3927_v42 = vld [vmem:[#allocation2 + $0xc8] sm:$0xff]   ;;  %v3928_v43 = vld [vmem:[#allocation2 + $0xd0] sm:$0xff]  }
  0x31   :  { %v3929_v44 = vld [vmem:[#allocation2 + $0xd8] sm:$0xff]   ;;  %v3930_v45 = vld [vmem:[#allocation2 + $0xe0] sm:$0xff]   ;;  %v3931_v46 = vld [vmem:[#allocation2 + $0xe8] sm:$0xff]  }
  0x32   :  { %3358 = vmatpush3.bf16.msra.mxu0 %v3904_v3  ;;  %3378 = vmatpush3.bf16.msra.mxu1 %v3912_v8  ;;  %v70_v30 = vrot.slane %v66_v28, %v4262_v29  ;;  %v2913_v47 = vld [vmem:[%s4601_s2 + $0x1] sm:$0x1]  ;;  %v3932_v58 = vld [vmem:[#allocation2 + $0xf0] sm:$0xff]   ;;  %v3933_v59 = vld [vmem:[#allocation2 + $0xf8] sm:$0xff]  }
  0x33   :  { %3359 = vmatprep.subr.bf16.mxu0 %v4173_v0  ;;  %3379 = vmatprep.subr.bf16.mxu1 %v4173_v0  ;;  %v181_v48 = vunpack.c.l.bf16 %v2913_v47  ;;  %v3934_v60 = vld [vmem:[#allocation2 + $0x100] sm:$0xff]   ;;  %v3935_v61 = vld [vmem:[#allocation2 + $0x108] sm:$0xff]   ;;  %v3936_v62 = vld [vmem:[#allocation2 + $0x110] sm:$0xff]  }
  0x34   :  { %v3937_v63 = vld [vmem:[#allocation2 + $0x118] sm:$0xff]   ;;  %v3938_v1 = vld [vmem:[#allocation2 + $0x120] sm:$0xff]   ;;  %v3939_v2 = vld [vmem:[#allocation2 + $0x128] sm:$0xff]  }
  0x35   :  { %v185_v49 = vrot.slane %v181_v48, %v4262_v29  ;;  %v2922_v3 = vld [vmem:[%s4601_s2 + $0x2] sm:$0x1]  ;;  %v3940_v14 = vld [vmem:[#allocation2 + $0x130] sm:$0xff]  }
  0x36   :  { %3360 = vmatpush3.bf16.msra.mxu0 %v3905_v5  ;;  %3380 = vmatpush3.bf16.msra.mxu1 %v3913_v10  ;;  %v296_v4 = vunpack.c.l.bf16 %v2922_v3 }
  0x37   :  { %3361 = vmatprep.subr.bf16.mxu0 %v4173_v0  ;;  %3381 = vmatprep.subr.bf16.mxu1 %v4173_v0 }
  0x38   :  { %v300_v5 = vrot.slane %v296_v4, %v4262_v29 }
  0x3a   :  { %3362 = vmatpush3.bf16.msra.mxu0 %v3906_v7  ;;  %3382 = vmatpush3.bf16.msra.mxu1 %v3914_v12 }
  0x3b   :  { %3363 = vmatprep.subr.bf16.mxu0 %v4173_v0  ;;  %3383 = vmatprep.subr.bf16.mxu1 %v4173_v0 }
  0x3e   :  { %3364 = vmatpush3.bf16.msra.mxu0 %v3907_v9  ;;  %3384 = vmatpush3.bf16.msra.mxu1 %v3915_v15  ;;  %v3941_v15 = vld [vmem:[#allocation2 + $0x138] sm:$0xff]  }
  0x3f   :  { %3365 = vmatprep.subr.bf16.mxu0 %v4173_v0  ;;  %3385 = vmatprep.subr.bf16.mxu1 %v4173_v0 }
  0x42   :  { %3366 = vmatpush3.bf16.msra.mxu0 %v3908_v11  ;;  %3386 = vmatpush3.bf16.msra.mxu1 %v3916_v17  ;;  %v3943_v17 = vld [vmem:[#allocation2 + $0x148] sm:$0xff]  }
  0x43   :  { %3367 = vmatprep.subr.bf16.mxu0 %v4173_v0  ;;  %3387 = vmatprep.subr.bf16.mxu1 %v4173_v0 }
  0x46   :  { %3368 = vmatpush3.bf16.msra.mxu0 %v3909_v13  ;;  %3388 = vmatpush3.bf16.msra.mxu1 %v3917_v18  ;;  %v3944_v18 = vld [vmem:[#allocation2 + $0x150] sm:$0xff]  }
  0x47   :  { %3393 = vmatprep.subr.bf16.mxu0 %v4173_v0  ;;  %3413 = vmatprep.subr.bf16.mxu1 %v4173_v0 }
  0x49   :  { %3370 = vmatmul.mubr.bf16.vlgmr.msra.gmra.mrb[0].mxu0 %v48_v16  ;;  %v3942_v16 = vld [vmem:[#allocation2 + $0x140] sm:$0xff]  }
  0x4a   :  { %3409 = vmatprep.mubr.msk.bf16.mxu0 %vm4174_vm0, %v4173_v0  ;;  %3394 = vmatpush3.bf16.msra.mxu0 %v3918_v19  ;;  %v3945_v19 = vld [vmem:[#allocation2 + $0x158] sm:$0xff]  }
  0x4b   :  { %3395 = vmatprep.subr.bf16.mxu0 %v4173_v0 }
  0x4e   :  { %3396 = vmatpush3.bf16.msra.mxu0 %v3919_v20  ;;  %v3946_v20 = vld [vmem:[#allocation2 + $0x160] sm:$0xff]  }
  0x4f   :  { %3397 = vmatprep.subr.bf16.mxu0 %v4173_v0 }
  0x52   :  { %3398 = vmatpush3.bf16.msra.mxu0 %v3920_v21  ;;  %v3947_v21 = vld [vmem:[#allocation2 + $0x168] sm:$0xff]  }
  0x53   :  { %3399 = vmatprep.subr.bf16.mxu0 %v4173_v0 }
  0x56   :  { %3400 = vmatpush3.bf16.msra.mxu0 %v3921_v22  ;;  %v2931_v22 = vld [vmem:[%s4601_s2 + $0x3] sm:$0x1] }
  0x57   :  { %3401 = vmatprep.subr.bf16.mxu0 %v4173_v0 }
  0x5a   :  { %3402 = vmatpush3.bf16.msra.mxu0 %v3922_v23  ;;  %v411_v23 = vunpack.c.l.bf16 %v2931_v22 }
  0x5b   :  { %3403 = vmatprep.subr.bf16.mxu0 %v4173_v0 }
  0x5e   :  { %3404 = vmatpush3.bf16.msra.mxu0 %v3923_v24  ;;  %v415_v24 = vrot.slane %v411_v23, %v4262_v29 }
  0x5f   :  { %3405 = vmatprep.subr.bf16.mxu0 %v4173_v0 }
  0x62   :  { %3406 = vmatpush3.bf16.msra.mxu0 %v3924_v39  ;;  %v3953_v39 = vld [vmem:[#allocation2 + $0x198] sm:$0xff]  }
  0x63   :  { %3407 = vmatprep.subr.bf16.mxu0 %v4173_v0 }
  0x66   :  { %3408 = vmatpush3.bf16.msra.mxu0 %v3925_v40  ;;  %v3954_v40 = vld [vmem:[#allocation2 + $0x1a0] sm:$0xff]  }
  0x67   :  { %3433 = vmatprep.subr.bf16.mxu0 %v4173_v0 }
 0x11c   :  { %v153_v31 = vpop.f32.mrb[0].mxu0 }
 0x11d   :  { %v154_v32 = vadd.f32 %v153_v31, %v70_v30  ;;  %v3371_v33 = vpop.f32.mrb[1].mxu0 }
 0x11e   :  { %v156_v34 = vpop.f32.mrb[2].mxu0 }
 0x11f   :  { %v159_v35 = vmul.f32 0.2, %v154_v32  ;;  %v3372_v36 = vpop.f32.mrb[3].mxu0  ;;  %v3948_v34 = vld [vmem:[#allocation2 + $0x170] sm:$0xff]  }
 0x120   :  { %v3950_v36 = vld [vmem:[#allocation2 + $0x180] sm:$0xff]  }
 0x121   :  { %v160_v37 = vmax.f32 %v154_v32, %v159_v35  ;;  %v3949_v35 = vld [vmem:[#allocation2 + $0x178] sm:$0xff]  }
 0x123   :  { %v161_v38 = vpack.c.bf16 %v160_v37, %v160_v37  ;;  %v3951_v37 = vld [vmem:[#allocation2 + $0x188] sm:$0xff]  }
 0x125   :  { %3390 = vmatmul.mubr.bf16.vlgmr.msra.gmra.mrb[0].mxu1 %v161_v38  ;;  %v3952_v38 = vld [vmem:[#allocation2 + $0x190] sm:$0xff]  }
 0x126   :  { %3429 = vmatprep.mubr.msk.bf16.mxu1 %vm4174_vm0, %v4173_v0  ;;  %3414 = vmatpush3.bf16.msra.mxu1 %v3926_v41  ;;  %v3955_v41 = vld [vmem:[#allocation2 + $0x1a8] sm:$0xff]  }
 0x127   :  { %3415 = vmatprep.subr.bf16.mxu1 %v4173_v0 }
 0x12a   :  { %3416 = vmatpush3.bf16.msra.mxu1 %v3927_v42  ;;  %v2940_v42 = vld [vmem:[%s4601_s2 + $0x4] sm:$0x1] }
 0x12b   :  { %3417 = vmatprep.subr.bf16.mxu1 %v4173_v0 }
 0x12e   :  { %3418 = vmatpush3.bf16.msra.mxu1 %v3928_v43  ;;  %v526_v43 = vunpack.c.l.bf16 %v2940_v42 }
 0x12f   :  { %3419 = vmatprep.subr.bf16.mxu1 %v4173_v0 }
 0x132   :  { %3420 = vmatpush3.bf16.msra.mxu1 %v3929_v44  ;;  %v530_v44 = vrot.slane %v526_v43, %v4262_v29 }
 0x133   :  { %3421 = vmatprep.subr.bf16.mxu1 %v4173_v0 }
 0x136   :  { %3422 = vmatpush3.bf16.msra.mxu1 %v3930_v45 }
 0x137   :  { %3423 = vmatprep.subr.bf16.mxu1 %v4173_v0 }
 0x13a   :  { %3424 = vmatpush3.bf16.msra.mxu1 %v3931_v46 }
 0x13b   :  { %3425 = vmatprep.subr.bf16.mxu1 %v4173_v0 }
 0x13e   :  { %3426 = vmatpush3.bf16.msra.mxu1 %v3932_v58  ;;  %v3961_v58 = vld [vmem:[#allocation2 + $0x1d8] sm:$0xff]  }
 0x13f   :  { %3427 = vmatprep.subr.bf16.mxu1 %v4173_v0 }
 0x142   :  { %3428 = vmatpush3.bf16.msra.mxu1 %v3933_v59  ;;  %v3962_v59 = vld [vmem:[#allocation2 + $0x1e0] sm:$0xff]  }
 0x143   :  { %3453 = vmatprep.subr.bf16.mxu1 %v4173_v0 }
 0x1f8   :  { %v268_v50 = vpop.f32.mrb[0].mxu1 }
 0x1f9   :  { %v269_v51 = vadd.f32 %v268_v50, %v185_v49  ;;  %v3391_v52 = vpop.f32.mrb[1].mxu1 }
 0x1fa   :  { %v271_v53 = vpop.f32.mrb[2].mxu1 }
 0x1fb   :  { %v274_v54 = vmul.f32 0.2, %v269_v51  ;;  %v3392_v55 = vpop.f32.mrb[3].mxu1  ;;  %v3956_v53 = vld [vmem:[#allocation2 + $0x1b0] sm:$0xff]  }
 0x1fc   :  { %v3958_v55 = vld [vmem:[#allocation2 + $0x1c0] sm:$0xff]  }
 0x1fd   :  { %v275_v56 = vmax.f32 %v269_v51, %v274_v54  ;;  %v3957_v54 = vld [vmem:[#allocation2 + $0x1b8] sm:$0xff]  }
 0x1ff   :  { %v276_v57 = vpack.c.bf16 %v275_v56, %v275_v56  ;;  %v3959_v56 = vld [vmem:[#allocation2 + $0x1c8] sm:$0xff]  }
 0x201   :  { %3410 = vmatmul.mubr.bf16.vlgmr.msra.gmra.mrb[4].mxu0 %v276_v57  ;;  %v3960_v57 = vld [vmem:[#allocation2 + $0x1d0] sm:$0xff]  }
 0x202   :  { %3449 = vmatprep.mubr.msk.bf16.mxu0 %vm4174_vm0, %v4173_v0  ;;  %3434 = vmatpush3.bf16.msra.mxu0 %v3934_v60  ;;  %v3963_v60 = vld [vmem:[#allocation2 + $0x1e8] sm:$0xff]  }
 0x203   :  { %3435 = vmatprep.subr.bf16.mxu0 %v4173_v0 }
 0x206   :  { %3436 = vmatpush3.bf16.msra.mxu0 %v3935_v61  ;;  %v2949_v61 = vld [vmem:[%s4601_s2 + $0x5] sm:$0x1] }
 0x207   :  { %3437 = vmatprep.subr.bf16.mxu0 %v4173_v0 }
 0x20a   :  { %3438 = vmatpush3.bf16.msra.mxu0 %v3936_v62  ;;  %v641_v62 = vunpack.c.l.bf16 %v2949_v61 }
 0x20b   :  { %3439 = vmatprep.subr.bf16.mxu0 %v4173_v0 }
 0x20e   :  { %3440 = vmatpush3.bf16.msra.mxu0 %v3937_v63  ;;  %v645_v63 = vrot.slane %v641_v62, %v4262_v29 }
 0x20f   :  { %3441 = vmatprep.subr.bf16.mxu0 %v4173_v0 }
 0x212   :  { %3442 = vmatpush3.bf16.msra.mxu0 %v3938_v1 }
 0x213   :  { %3443 = vmatprep.subr.bf16.mxu0 %v4173_v0 }
 0x216   :  { %3444 = vmatpush3.bf16.msra.mxu0 %v3939_v2 }
 0x217   :  { %3445 = vmatprep.subr.bf16.mxu0 %v4173_v0 }
 0x21a   :  { %3446 = vmatpush3.bf16.msra.mxu0 %v3940_v14  ;;  %v3969_v14 = vld [vmem:[#allocation2 + $0x218] sm:$0xff]  }
 0x21b   :  { %3447 = vmatprep.subr.bf16.mxu0 %v4173_v0 }
 0x21e   :  { %3448 = vmatpush3.bf16.msra.mxu0 %v3941_v15  ;;  %v3970_v15 = vld [vmem:[#allocation2 + $0x220] sm:$0xff]  }
 0x21f   :  { %3473 = vmatprep.subr.bf16.mxu0 %v4173_v0 }
 0x2d4   :  { %v383_v6 = vpop.f32.mrb[4].mxu0 }
 0x2d5   :  { %v384_v7 = vadd.f32 %v383_v6, %v300_v5  ;;  %v3411_v8 = vpop.f32.mrb[5].mxu0  ;;  %v4094_v5 = vld [vmem:[%s4599_s0] sm:$0xff] }
 0x2d6   :  { %v386_v9 = vpop.f32.mrb[6].mxu0 }
 0x2d7   :  { %v389_v10 = vmul.f32 0.2, %v384_v7  ;;  %v3412_v11 = vpop.f32.mrb[7].mxu0  ;;  %v3964_v9 = vld [vmem:[#allocation2 + $0x1f0] sm:$0xff]  }
 0x2d8   :  { %v3966_v11 = vld [vmem:[#allocation2 + $0x200] sm:$0xff]  }
 0x2d9   :  { %v390_v12 = vmax.f32 %v384_v7, %v389_v10  ;;  %v3965_v10 = vld [vmem:[#allocation2 + $0x1f8] sm:$0xff]  }
 0x2db   :  { %v391_v13 = vpack.c.bf16 %v390_v12, %v390_v12  ;;  %v3967_v12 = vld [vmem:[#allocation2 + $0x208] sm:$0xff]  }
 0x2dd   :  { %3430 = vmatmul.mubr.bf16.vlgmr.msra.gmra.mrb[4].mxu1 %v391_v13  ;;  %v3968_v13 = vld [vmem:[#allocation2 + $0x210] sm:$0xff]  }
 0x2de   :  { %3469 = vmatprep.mubr.msk.bf16.mxu1 %vm4174_vm0, %v4173_v0  ;;  %3454 = vmatpush3.bf16.msra.mxu1 %v3942_v16  ;;  %v3971_v16 = vld [vmem:[#allocation2 + $0x228] sm:$0xff]  }
 0x2df   :  { %3455 = vmatprep.subr.bf16.mxu1 %v4173_v0 }
 0x2e2   :  { %3456 = vmatpush3.bf16.msra.mxu1 %v3943_v17  ;;  %v2958_v17 = vld [vmem:[%s4601_s2 + $0x6] sm:$0x1] }
 0x2e3   :  { %3457 = vmatprep.subr.bf16.mxu1 %v4173_v0 }
 0x2e6   :  { %3458 = vmatpush3.bf16.msra.mxu1 %v3944_v18  ;;  %v755_v18 = vunpack.c.l.bf16 %v2958_v17 }
 0x2e7   :  { %3459 = vmatprep.subr.bf16.mxu1 %v4173_v0 }
 0x2ea   :  { %3460 = vmatpush3.bf16.msra.mxu1 %v3945_v19  ;;  %v759_v19 = vrot.slane %v755_v18, %v4262_v29 }
 0x2eb   :  { %3461 = vmatprep.subr.bf16.mxu1 %v4173_v0 }
 0x2ee   :  { %3462 = vmatpush3.bf16.msra.mxu1 %v3946_v20 }
 0x2ef   :  { %3463 = vmatprep.subr.bf16.mxu1 %v4173_v0 }
 0x2f2   :  { %3464 = vmatpush3.bf16.msra.mxu1 %v3947_v21 }
 0x2f3   :  { %3465 = vmatprep.subr.bf16.mxu1 %v4173_v0 }
 0x2f6   :  { %3466 = vmatpush3.bf16.msra.mxu1 %v3948_v34  ;;  %v3977_v34 = vld [vmem:[#allocation2 + $0x258] sm:$0xff]  }
 0x2f7   :  { %3467 = vmatprep.subr.bf16.mxu1 %v4173_v0 }
 0x2fa   :  { %3468 = vmatpush3.bf16.msra.mxu1 %v3949_v35  ;;  %v3978_v35 = vld [vmem:[#allocation2 + $0x260] sm:$0xff]  }
 0x2fb   :  { %3493 = vmatprep.subr.bf16.mxu1 %v4173_v0 }
 0x3b0   :  { %v498_v25 = vpop.f32.mrb[4].mxu1 }
 0x3b1   :  { %v499_v26 = vadd.f32 %v498_v25, %v415_v24  ;;  %v3431_v27 = vpop.f32.mrb[5].mxu1 }
 0x3b2   :  { %v501_v28 = vpop.f32.mrb[6].mxu1 }
 0x3b3   :  { %v504_v30 = vmul.f32 0.2, %v499_v26  ;;  %v3432_v31 = vpop.f32.mrb[7].mxu1  ;;  %v3972_v28 = vld [vmem:[#allocation2 + $0x230] sm:$0xff]  }
 0x3b4   :  { %v3974_v31 = vld [vmem:[#allocation2 + $0x240] sm:$0xff]  }
 0x3b5   :  { %v505_v32 = vmax.f32 %v499_v26, %v504_v30  ;;  %v3973_v30 = vld [vmem:[#allocation2 + $0x238] sm:$0xff]  }
 0x3b7   :  { %v506_v33 = vpack.c.bf16 %v505_v32, %v505_v32  ;;  %v3975_v32 = vld [vmem:[#allocation2 + $0x248] sm:$0xff]  }
 0x3b9   :  { %3450 = vmatmul.mubr.bf16.vlgmr.msra.gmra.mrb[8].mxu0 %v506_v33  ;;  %v3976_v33 = vld [vmem:[#allocation2 + $0x250] sm:$0xff]  }
 0x3ba   :  { %3489 = vmatprep.mubr.msk.bf16.mxu0 %vm4174_vm0, %v4173_v0  ;;  %3474 = vmatpush3.bf16.msra.mxu0 %v3950_v36  ;;  %v3979_v36 = vld [vmem:[#allocation2 + $0x268] sm:$0xff]  }
 0x3bb   :  { %3475 = vmatprep.subr.bf16.mxu0 %v4173_v0 }
 0x3be   :  { %3476 = vmatpush3.bf16.msra.mxu0 %v3951_v37  ;;  %v2967_v37 = vld [vmem:[%s4601_s2 + $0x7] sm:$0x1] }
 0x3bf   :  { %3477 = vmatprep.subr.bf16.mxu0 %v4173_v0 }
 0x3c2   :  { %3478 = vmatpush3.bf16.msra.mxu0 %v3952_v38  ;;  %v870_v38 = vunpack.c.l.bf16 %v2967_v37 }
 0x3c3   :  { %3479 = vmatprep.subr.bf16.mxu0 %v4173_v0 }
 0x3c6   :  { %3480 = vmatpush3.bf16.msra.mxu0 %v3953_v39  ;;  %v874_v39 = vrot.slane %v870_v38, %v4262_v29 }
 0x3c7   :  { %3481 = vmatprep.subr.bf16.mxu0 %v4173_v0 }
 0x3ca   :  { %3482 = vmatpush3.bf16.msra.mxu0 %v3954_v40 }
 0x3cb   :  { %3483 = vmatprep.subr.bf16.mxu0 %v4173_v0 }
 0x3ce   :  { %3484 = vmatpush3.bf16.msra.mxu0 %v3955_v41 }
 0x3cf   :  { %3485 = vmatprep.subr.bf16.mxu0 %v4173_v0 }
 0x3d2   :  { %3486 = vmatpush3.bf16.msra.mxu0 %v3956_v53  ;;  %v3985_v53 = vld [vmem:[#allocation2 + $0x298] sm:$0xff]  }
 0x3d3   :  { %3487 = vmatprep.subr.bf16.mxu0 %v4173_v0 }
 0x3d6   :  { %3488 = vmatpush3.bf16.msra.mxu0 %v3957_v54  ;;  %v3986_v54 = vld [vmem:[#allocation2 + $0x2a0] sm:$0xff]  }
 0x3d7   :  { %3513 = vmatprep.subr.bf16.mxu0 %v4173_v0 }
 0x48c   :  { %v613_v45 = vpop.f32.mrb[8].mxu0 }
 0x48d   :  { %v614_v46 = vadd.f32 %v613_v45, %v530_v44  ;;  %v3451_v47 = vpop.f32.mrb[9].mxu0 }
 0x48e   :  { %v616_v48 = vpop.f32.mrb[10].mxu0 }
 0x48f   :  { %v619_v49 = vmul.f32 0.2, %v614_v46  ;;  %v3452_v50 = vpop.f32.mrb[11].mxu0  ;;  %v3980_v48 = vld [vmem:[#allocation2 + $0x270] sm:$0xff]  }
 0x490   :  { %v3982_v50 = vld [vmem:[#allocation2 + $0x280] sm:$0xff]  }
 0x491   :  { %v620_v51 = vmax.f32 %v614_v46, %v619_v49  ;;  %v3981_v49 = vld [vmem:[#allocation2 + $0x278] sm:$0xff]  }
 0x493   :  { %v621_v52 = vpack.c.bf16 %v620_v51, %v620_v51  ;;  %v3983_v51 = vld [vmem:[#allocation2 + $0x288] sm:$0xff]  }
 0x495   :  { %3470 = vmatmul.mubr.bf16.vlgmr.msra.gmra.mrb[8].mxu1 %v621_v52  ;;  %v3984_v52 = vld [vmem:[#allocation2 + $0x290] sm:$0xff]  }
 0x496   :  { %3509 = vmatprep.mubr.msk.bf16.mxu1 %vm4174_vm0, %v4173_v0  ;;  %3494 = vmatpush3.bf16.msra.mxu1 %v3958_v55  ;;  %v3987_v55 = vld [vmem:[#allocation2 + $0x2a8] sm:$0xff]  }
 0x497   :  { %3495 = vmatprep.subr.bf16.mxu1 %v4173_v0 }
 0x49a   :  { %3496 = vmatpush3.bf16.msra.mxu1 %v3959_v56  ;;  %v2976_v56 = vld [vmem:[%s4601_s2 + $0x8] sm:$0x1] }
 0x49b   :  { %3497 = vmatprep.subr.bf16.mxu1 %v4173_v0 }
 0x49e   :  { %3498 = vmatpush3.bf16.msra.mxu1 %v3960_v57  ;;  %v985_v57 = vunpack.c.l.bf16 %v2976_v56 }
 0x49f   :  { %3499 = vmatprep.subr.bf16.mxu1 %v4173_v0 }
 0x4a2   :  { %3500 = vmatpush3.bf16.msra.mxu1 %v3961_v58  ;;  %v989_v58 = vrot.slane %v985_v57, %v4262_v29 }
 0x4a3   :  { %3501 = vmatprep.subr.bf16.mxu1 %v4173_v0 }
 0x4a6   :  { %3502 = vmatpush3.bf16.msra.mxu1 %v3962_v59 }
 0x4a7   :  { %3503 = vmatprep.subr.bf16.mxu1 %v4173_v0 }
 0x4aa   :  { %3504 = vmatpush3.bf16.msra.mxu1 %v3963_v60 }
 0x4ab   :  { %3505 = vmatprep.subr.bf16.mxu1 %v4173_v0 }
 0x4ae   :  { %3506 = vmatpush3.bf16.msra.mxu1 %v3964_v9  ;;  %v3992_v9 = vld [vmem:[#allocation2 + $0x2d0] sm:$0xff]  }
 0x4af   :  { %3507 = vmatprep.subr.bf16.mxu1 %v4173_v0 }
 0x4b2   :  { %3508 = vmatpush3.bf16.msra.mxu1 %v3965_v10  ;;  %v3993_v10 = vld [vmem:[#allocation2 + $0x2d8] sm:$0xff]  }
 0x4b3   :  { %3533 = vmatprep.subr.bf16.mxu1 %v4173_v0 }
 0x568   :  { %v728_v1 = vpop.f32.mrb[8].mxu1 }
 0x569   :  { %v729_v2 = vadd.f32 %v728_v1, %v645_v63  ;;  %v3471_v3 = vpop.f32.mrb[9].mxu1 }
 0x56a   :  { %v731_v4 = vpop.f32.mrb[10].mxu1 }
 0x56b   :  { %v4338_v6 = vadd.f32 %v4094_v5, %v729_v2  ;;  %v3472_v7 = vpop.f32.mrb[11].mxu1  ;;  %v3988_v4 = vld [vmem:[#allocation2 + $0x2b0] sm:$0xff]   ;;  %v3989_v5 = vld [vmem:[#allocation2 + $0x2b8] sm:$0xff]  }
 0x56c   :  { %v3990_v7 = vld [vmem:[#allocation2 + $0x2c0] sm:$0xff]  }
 0x56d   :  { %v735_v8 = vpack.c.bf16 %v4338_v6, %v4338_v6 }
 0x56f   :  { %3490 = vmatmul.mubr.bf16.vlgmr.msra.gmra.mrb[12].mxu0 %v735_v8  ;;  %v3991_v8 = vld [vmem:[#allocation2 + $0x2c8] sm:$0xff]  }
 0x570   :  { %3529 = vmatprep.mubr.msk.bf16.mxu0 %vm4174_vm0, %v4173_v0  ;;  %3514 = vmatpush3.bf16.msra.mxu0 %v3966_v11  ;;  %v3994_v11 = vld [vmem:[#allocation2 + $0x2e0] sm:$0xff]  }
 0x571   :  { %3515 = vmatprep.subr.bf16.mxu0 %v4173_v0 }
 0x574   :  { %3516 = vmatpush3.bf16.msra.mxu0 %v3967_v12  ;;  %v3995_v12 = vld [vmem:[#allocation2 + $0x2e8] sm:$0xff]  }
 0x575   :  { %3517 = vmatprep.subr.bf16.mxu0 %v4173_v0 }
 0x578   :  { %3518 = vmatpush3.bf16.msra.mxu0 %v3968_v13  ;;  %v2985_v13 = vld [vmem:[%s4601_s2 + $0x9] sm:$0x1] }
 0x579   :  { %3519 = vmatprep.subr.bf16.mxu0 %v4173_v0 }
 0x57c   :  { %3520 = vmatpush3.bf16.msra.mxu0 %v3969_v14  ;;  %v1100_v14 = vunpack.c.l.bf16 %v2985_v13 }
 0x57d   :  { %3521 = vmatprep.subr.bf16.mxu0 %v4173_v0 }
 0x580   :  { %3522 = vmatpush3.bf16.msra.mxu0 %v3970_v15  ;;  %v1104_v15 = vrot.slane %v1100_v14, %v4262_v29 }
 0x581   :  { %3523 = vmatprep.subr.bf16.mxu0 %v4173_v0 }
 0x584   :  { %3524 = vmatpush3.bf16.msra.mxu0 %v3971_v16 }
 0x585   :  { %3525 = vmatprep.subr.bf16.mxu0 %v4173_v0 }
 0x588   :  { %3526 = vmatpush3.bf16.msra.mxu0 %v3972_v28  ;;  %v4000_v28 = vld [vmem:[#allocation2 + $0x310] sm:$0xff]  }
 0x589   :  { %3527 = vmatprep.subr.bf16.mxu0 %v4173_v0 }
 0x58c   :  { %3528 = vmatpush3.bf16.msra.mxu0 %v3973_v30  ;;  %v4001_v30 = vld [vmem:[#allocation2 + $0x318] sm:$0xff]  }
 0x58d   :  { %3553 = vmatprep.subr.bf16.mxu0 %v4173_v0 }
 0x642   :  { %v842_v20 = vpop.f32.mrb[12].mxu0 }
 0x643   :  { %v843_v21 = vadd.f32 %v842_v20, %v759_v19  ;;  %v3491_v22 = vpop.f32.mrb[13].mxu0 }
 0x644   :  { %v845_v23 = vpop.f32.mrb[14].mxu0 }
 0x645   :  { %v848_v24 = vmul.f32 0.2, %v843_v21  ;;  %v3492_v25 = vpop.f32.mrb[15].mxu0 }
 0x646   :  { %v3997_v25 = vld [vmem:[#allocation2 + $0x2f8] sm:$0xff]  }
 0x647   :  { %v849_v26 = vmax.f32 %v843_v21, %v848_v24  ;;  %v3996_v24 = vld [vmem:[#allocation2 + $0x2f0] sm:$0xff]  }
 0x649   :  { %v850_v27 = vpack.c.bf16 %v849_v26, %v849_v26  ;;  %v3998_v26 = vld [vmem:[#allocation2 + $0x300] sm:$0xff]  }
 0x64b   :  { %3510 = vmatmul.mubr.bf16.vlgmr.msra.gmra.mrb[12].mxu1 %v850_v27  ;;  %v3999_v27 = vld [vmem:[#allocation2 + $0x308] sm:$0xff]  }
 0x64c   :  { %3549 = vmatprep.mubr.msk.bf16.mxu1 %vm4174_vm0, %v4173_v0  ;;  %3534 = vmatpush3.bf16.msra.mxu1 %v3974_v31  ;;  %v4002_v31 = vld [vmem:[#allocation2 + $0x320] sm:$0xff]  }
 0x64d   :  { %3535 = vmatprep.subr.bf16.mxu1 %v4173_v0 }
 0x650   :  { %3536 = vmatpush3.bf16.msra.mxu1 %v3975_v32  ;;  %v4003_v32 = vld [vmem:[#allocation2 + $0x328] sm:$0xff]  }
 0x651   :  { %3537 = vmatprep.subr.bf16.mxu1 %v4173_v0 }
 0x654   :  { %3538 = vmatpush3.bf16.msra.mxu1 %v3976_v33  ;;  %v2994_v33 = vld [vmem:[%s4601_s2 + $0xa] sm:$0x1] }
 0x655   :  { %3539 = vmatprep.subr.bf16.mxu1 %v4173_v0 }
 0x658   :  { %3540 = vmatpush3.bf16.msra.mxu1 %v3977_v34  ;;  %v1215_v34 = vunpack.c.l.bf16 %v2994_v33 }
 0x659   :  { %3541 = vmatprep.subr.bf16.mxu1 %v4173_v0 }
 0x65c   :  { %3542 = vmatpush3.bf16.msra.mxu1 %v3978_v35  ;;  %v1219_v35 = vrot.slane %v1215_v34, %v4262_v29 }
 0x65d   :  { %3543 = vmatprep.subr.bf16.mxu1 %v4173_v0 }
 0x660   :  { %3544 = vmatpush3.bf16.msra.mxu1 %v3979_v36 }
 0x661   :  { %3545 = vmatprep.subr.bf16.mxu1 %v4173_v0 }
 0x664   :  { %3546 = vmatpush3.bf16.msra.mxu1 %v3980_v48  ;;  %v4008_v48 = vld [vmem:[#allocation2 + $0x350] sm:$0xff]  }
 0x665   :  { %3547 = vmatprep.subr.bf16.mxu1 %v4173_v0 }
 0x668   :  { %3548 = vmatpush3.bf16.msra.mxu1 %v3981_v49  ;;  %v4009_v49 = vld [vmem:[#allocation2 + $0x358] sm:$0xff]  }
 0x669   :  { %3573 = vmatprep.subr.bf16.mxu1 %v4173_v0 }
 0x71e   :  { %v957_v40 = vpop.f32.mrb[12].mxu1 }
 0x71f   :  { %v958_v41 = vadd.f32 %v957_v40, %v874_v39  ;;  %v3511_v42 = vpop.f32.mrb[13].mxu1 }
 0x720   :  { %v960_v43 = vpop.f32.mrb[14].mxu1 }
 0x721   :  { %v963_v44 = vmul.f32 0.2, %v958_v41  ;;  %v3512_v45 = vpop.f32.mrb[15].mxu1 }
 0x722   :  { %v4005_v45 = vld [vmem:[#allocation2 + $0x338] sm:$0xff]  }
 0x723   :  { %v964_v46 = vmax.f32 %v958_v41, %v963_v44  ;;  %v4004_v44 = vld [vmem:[#allocation2 + $0x330] sm:$0xff]  }
 0x725   :  { %v965_v47 = vpack.c.bf16 %v964_v46, %v964_v46  ;;  %v4006_v46 = vld [vmem:[#allocation2 + $0x340] sm:$0xff]  }
 0x727   :  { %3530 = vmatmul.mubr.bf16.vlgmr.msra.gmra.mrb[16].mxu0 %v965_v47  ;;  %v4007_v47 = vld [vmem:[#allocation2 + $0x348] sm:$0xff]  }
 0x728   :  { %3569 = vmatprep.mubr.msk.bf16.mxu0 %vm4174_vm0, %v4173_v0  ;;  %3554 = vmatpush3.bf16.msra.mxu0 %v3982_v50  ;;  %v4010_v50 = vld [vmem:[#allocation2 + $0x360] sm:$0xff]  }
 0x729   :  { %3555 = vmatprep.subr.bf16.mxu0 %v4173_v0 }
 0x72c   :  { %3556 = vmatpush3.bf16.msra.mxu0 %v3983_v51  ;;  %v4011_v51 = vld [vmem:[#allocation2 + $0x368] sm:$0xff]  }
 0x72d   :  { %3557 = vmatprep.subr.bf16.mxu0 %v4173_v0 }
 0x730   :  { %3558 = vmatpush3.bf16.msra.mxu0 %v3984_v52  ;;  %v3003_v52 = vld [vmem:[%s4601_s2 + $0xb] sm:$0x1] }
 0x731   :  { %3559 = vmatprep.subr.bf16.mxu0 %v4173_v0 }
 0x734   :  { %3560 = vmatpush3.bf16.msra.mxu0 %v3985_v53  ;;  %v1330_v53 = vunpack.c.l.bf16 %v3003_v52 }
 0x735   :  { %3561 = vmatprep.subr.bf16.mxu0 %v4173_v0 }
 0x738   :  { %3562 = vmatpush3.bf16.msra.mxu0 %v3986_v54  ;;  %v1334_v54 = vrot.slane %v1330_v53, %v4262_v29 }
 0x739   :  { %3563 = vmatprep.subr.bf16.mxu0 %v4173_v0 }
 0x73c   :  { %3564 = vmatpush3.bf16.msra.mxu0 %v3987_v55 }
 0x73d   :  { %3565 = vmatprep.subr.bf16.mxu0 %v4173_v0 }
 0x740   :  { %3566 = vmatpush3.bf16.msra.mxu0 %v3988_v4  ;;  %v4018_v4 = vld [vmem:[#allocation2 + $0x3a0] sm:$0xff]  }
 0x741   :  { %3567 = vmatprep.subr.bf16.mxu0 %v4173_v0 }
 0x744   :  { %3568 = vmatpush3.bf16.msra.mxu0 %v3989_v5  ;;  %v4019_v5 = vld [vmem:[#allocation2 + $0x3a8] sm:$0xff]  }
 0x745   :  { %3593 = vmatprep.subr.bf16.mxu0 %v4173_v0 }
 0x7fa   :  { %v1072_v59 = vpop.f32.mrb[16].mxu0 }
 0x7fb   :  { %v1073_v60 = vadd.f32 %v1072_v59, %v989_v58  ;;  %v3531_v61 = vpop.f32.mrb[17].mxu0 }
 0x7fc   :  { %v1075_v62 = vpop.f32.mrb[18].mxu0 }
 0x7fd   :  { %v1078_v63 = vmul.f32 0.2, %v1073_v60  ;;  %v3532_v1 = vpop.f32.mrb[19].mxu0  ;;  %v4012_v62 = vld [vmem:[#allocation2 + $0x370] sm:$0xff]  }
 0x7fe   :  { %v4014_v1 = vld [vmem:[#allocation2 + $0x380] sm:$0xff]  }
 0x7ff   :  { %v1079_v2 = vmax.f32 %v1073_v60, %v1078_v63  ;;  %v4013_v63 = vld [vmem:[#allocation2 + $0x378] sm:$0xff]  }
 0x801   :  { %v1080_v3 = vpack.c.bf16 %v1079_v2, %v1079_v2  ;;  %v4016_v2 = vld [vmem:[#allocation2 + $0x390] sm:$0xff]  }
 0x803   :  { %3550 = vmatmul.mubr.bf16.vlgmr.msra.gmra.mrb[16].mxu1 %v1080_v3  ;;  %v4017_v3 = vld [vmem:[#allocation2 + $0x398] sm:$0xff]  }
 0x804   :  { %3589 = vmatprep.mubr.msk.bf16.mxu1 %vm4174_vm0, %v4173_v0  ;;  %3574 = vmatpush3.bf16.msra.mxu1 %v3990_v7  ;;  %v3012_v7 = vld [vmem:[%s4601_s2 + $0xc] sm:$0x1] }
 0x805   :  { %3575 = vmatprep.subr.bf16.mxu1 %v4173_v0 }
 0x808   :  { %3576 = vmatpush3.bf16.msra.mxu1 %v3991_v8  ;;  %v1444_v8 = vunpack.c.l.bf16 %v3012_v7 }
 0x809   :  { %3577 = vmatprep.subr.bf16.mxu1 %v4173_v0 }
 0x80c   :  { %3578 = vmatpush3.bf16.msra.mxu1 %v3992_v9  ;;  %v1448_v9 = vrot.slane %v1444_v8, %v4262_v29 }
 0x80d   :  { %3579 = vmatprep.subr.bf16.mxu1 %v4173_v0 }
 0x810   :  { %3580 = vmatpush3.bf16.msra.mxu1 %v3993_v10 }
 0x811   :  { %3581 = vmatprep.subr.bf16.mxu1 %v4173_v0 }
 0x814   :  { %3582 = vmatpush3.bf16.msra.mxu1 %v3994_v11 }
 0x815   :  { %3583 = vmatprep.subr.bf16.mxu1 %v4173_v0 }
 0x818   :  { %3584 = vmatpush3.bf16.msra.mxu1 %v3995_v12 }
 0x819   :  { %3585 = vmatprep.subr.bf16.mxu1 %v4173_v0 }
 0x81c   :  { %3586 = vmatpush3.bf16.msra.mxu1 %v3996_v24  ;;  %v4026_v24 = vld [vmem:[#allocation2 + $0x3e0] sm:$0xff]  }
 0x81d   :  { %3587 = vmatprep.subr.bf16.mxu1 %v4173_v0 }
 0x820   :  { %3588 = vmatpush3.bf16.msra.mxu1 %v3997_v25  ;;  %v4027_v25 = vld [vmem:[#allocation2 + $0x3e8] sm:$0xff]  }
 0x821   :  { %3613 = vmatprep.subr.bf16.mxu1 %v4173_v0 }
 0x8d6   :  { %v1187_v16 = vpop.f32.mrb[16].mxu1 }
 0x8d7   :  { %v1188_v17 = vadd.f32 %v1187_v16, %v1104_v15  ;;  %v3551_v18 = vpop.f32.mrb[17].mxu1 }
 0x8d8   :  { %v1190_v19 = vpop.f32.mrb[18].mxu1  ;;  %v4020_v18 = vld [vmem:[#allocation2 + $0x3b0] sm:$0xff]  }
 0x8d9   :  { %v1193_v20 = vmul.f32 0.2, %v1188_v17  ;;  %v3552_v21 = vpop.f32.mrb[19].mxu1  ;;  %v4021_v19 = vld [vmem:[#allocation2 + $0x3b8] sm:$0xff]  }
 0x8da   :  { %v4023_v21 = vld [vmem:[#allocation2 + $0x3c8] sm:$0xff]  }
 0x8db   :  { %v1194_v22 = vmax.f32 %v1188_v17, %v1193_v20  ;;  %v4022_v20 = vld [vmem:[#allocation2 + $0x3c0] sm:$0xff]  }
 0x8dd   :  { %v1195_v23 = vpack.c.bf16 %v1194_v22, %v1194_v22  ;;  %v4024_v22 = vld [vmem:[#allocation2 + $0x3d0] sm:$0xff]  }
 0x8df   :  { %3570 = vmatmul.mubr.bf16.vlgmr.msra.gmra.mrb[20].mxu0 %v1195_v23  ;;  %v4025_v23 = vld [vmem:[#allocation2 + $0x3d8] sm:$0xff]  }
 0x8e0   :  { %3609 = vmatprep.mubr.msk.bf16.mxu0 %vm4174_vm0, %v4173_v0  ;;  %3594 = vmatpush3.bf16.msra.mxu0 %v3998_v26  ;;  %v3021_v26 = vld [vmem:[%s4601_s2 + $0xd] sm:$0x1] }
 0x8e1   :  { %3595 = vmatprep.subr.bf16.mxu0 %v4173_v0 }
 0x8e4   :  { %3596 = vmatpush3.bf16.msra.mxu0 %v3999_v27  ;;  %v1559_v27 = vunpack.c.l.bf16 %v3021_v26 }
 0x8e5   :  { %3597 = vmatprep.subr.bf16.mxu0 %v4173_v0 }
 0x8e8   :  { %3598 = vmatpush3.bf16.msra.mxu0 %v4000_v28  ;;  %v1563_v28 = vrot.slane %v1559_v27, %v4262_v29 }
 0x8e9   :  { %3599 = vmatprep.subr.bf16.mxu0 %v4173_v0 }
 0x8ec   :  { %3600 = vmatpush3.bf16.msra.mxu0 %v4001_v30 }
 0x8ed   :  { %3601 = vmatprep.subr.bf16.mxu0 %v4173_v0 }
 0x8f0   :  { %3602 = vmatpush3.bf16.msra.mxu0 %v4002_v31 }
 0x8f1   :  { %3603 = vmatprep.subr.bf16.mxu0 %v4173_v0 }
 0x8f4   :  { %3604 = vmatpush3.bf16.msra.mxu0 %v4003_v32 }
 0x8f5   :  { %3605 = vmatprep.subr.bf16.mxu0 %v4173_v0 }
 0x8f8   :  { %3606 = vmatpush3.bf16.msra.mxu0 %v4004_v44  ;;  %v4034_v44 = vld [vmem:[#allocation2 + $0x420] sm:$0xff]  }
 0x8f9   :  { %3607 = vmatprep.subr.bf16.mxu0 %v4173_v0 }
 0x8fc   :  { %3608 = vmatpush3.bf16.msra.mxu0 %v4005_v45  ;;  %v4035_v45 = vld [vmem:[#allocation2 + $0x428] sm:$0xff]  }
 0x8fd   :  { %3633 = vmatprep.subr.bf16.mxu0 %v4173_v0 }
 0x9b2   :  { %v1302_v36 = vpop.f32.mrb[20].mxu0 }
 0x9b3   :  { %v1303_v37 = vadd.f32 %v1302_v36, %v1219_v35  ;;  %v3571_v38 = vpop.f32.mrb[21].mxu0 }
 0x9b4   :  { %v1305_v39 = vpop.f32.mrb[22].mxu0  ;;  %v4028_v38 = vld [vmem:[#allocation2 + $0x3f0] sm:$0xff]  }
 0x9b5   :  { %v1308_v40 = vmul.f32 0.2, %v1303_v37  ;;  %v3572_v41 = vpop.f32.mrb[23].mxu0  ;;  %v4029_v39 = vld [vmem:[#allocation2 + $0x3f8] sm:$0xff]  }
 0x9b6   :  { %v4031_v41 = vld [vmem:[#allocation2 + $0x408] sm:$0xff]  }
 0x9b7   :  { %v1309_v42 = vmax.f32 %v1303_v37, %v1308_v40  ;;  %v4030_v40 = vld [vmem:[#allocation2 + $0x400] sm:$0xff]  }
 0x9b9   :  { %v1310_v43 = vpack.c.bf16 %v1309_v42, %v1309_v42  ;;  %v4032_v42 = vld [vmem:[#allocation2 + $0x410] sm:$0xff]  }
 0x9bb   :  { %3590 = vmatmul.mubr.bf16.vlgmr.msra.gmra.mrb[20].mxu1 %v1310_v43  ;;  %v4033_v43 = vld [vmem:[#allocation2 + $0x418] sm:$0xff]  }
 0x9bc   :  { %3629 = vmatprep.mubr.msk.bf16.mxu1 %vm4174_vm0, %v4173_v0  ;;  %3614 = vmatpush3.bf16.msra.mxu1 %v4006_v46  ;;  %v3030_v46 = vld [vmem:[%s4601_s2 + $0xe] sm:$0x1] }
 0x9bd   :  { %3615 = vmatprep.subr.bf16.mxu1 %v4173_v0 }
 0x9c0   :  { %3616 = vmatpush3.bf16.msra.mxu1 %v4007_v47  ;;  %v1674_v47 = vunpack.c.l.bf16 %v3030_v46 }
 0x9c1   :  { %3617 = vmatprep.subr.bf16.mxu1 %v4173_v0 }
 0x9c4   :  { %3618 = vmatpush3.bf16.msra.mxu1 %v4008_v48  ;;  %v1678_v48 = vrot.slane %v1674_v47, %v4262_v29 }
 0x9c5   :  { %3619 = vmatprep.subr.bf16.mxu1 %v4173_v0 }
 0x9c8   :  { %3620 = vmatpush3.bf16.msra.mxu1 %v4009_v49 }
 0x9c9   :  { %3621 = vmatprep.subr.bf16.mxu1 %v4173_v0 }
 0x9cc   :  { %3622 = vmatpush3.bf16.msra.mxu1 %v4010_v50 }
 0x9cd   :  { %3623 = vmatprep.subr.bf16.mxu1 %v4173_v0 }
 0x9d0   :  { %3624 = vmatpush3.bf16.msra.mxu1 %v4011_v51 }
 0x9d1   :  { %3625 = vmatprep.subr.bf16.mxu1 %v4173_v0 }
 0x9d4   :  { %3626 = vmatpush3.bf16.msra.mxu1 %v4012_v62  ;;  %v4040_v62 = vld [vmem:[#allocation2 + $0x450] sm:$0xff]  }
 0x9d5   :  { %3627 = vmatprep.subr.bf16.mxu1 %v4173_v0 }
 0x9d8   :  { %3628 = vmatpush3.bf16.msra.mxu1 %v4013_v63  ;;  %v4041_v63 = vld [vmem:[#allocation2 + $0x458] sm:$0xff]  }
 0x9d9   :  { %3653 = vmatprep.subr.bf16.mxu1 %v4173_v0 }
 0xa8e   :  { %v1417_v55 = vpop.f32.mrb[20].mxu1 }
 0xa8f   :  { %v1418_v56 = vadd.f32 %v1417_v55, %v1334_v54  ;;  %v3591_v57 = vpop.f32.mrb[21].mxu1 }
 0xa90   :  { %v1420_v58 = vpop.f32.mrb[22].mxu1  ;;  %v4036_v57 = vld [vmem:[#allocation2 + $0x430] sm:$0xff]  }
 0xa91   :  { %v4427_v59 = vadd.f32 %v1418_v56, %v4338_v6  ;;  %v3592_v60 = vpop.f32.mrb[23].mxu1  ;;  %v4015_v6 = vld [vmem:[#allocation2 + $0x388] sm:$0xff]   ;;  %v4037_v58 = vld [vmem:[#allocation2 + $0x438] sm:$0xff]  }
 0xa92   :  { %v4038_v60 = vld [vmem:[#allocation2 + $0x440] sm:$0xff]  }
 0xa93   :  { %v1424_v61 = vpack.c.bf16 %v4427_v59, %v4427_v59 }
 0xa95   :  { %3610 = vmatmul.mubr.bf16.vlgmr.msra.gmra.mrb[24].mxu0 %v1424_v61  ;;  %v4039_v61 = vld [vmem:[#allocation2 + $0x448] sm:$0xff]  }
 0xa96   :  { %3649 = vmatprep.mubr.msk.bf16.mxu0 %vm4174_vm0, %v4173_v0  ;;  %3634 = vmatpush3.bf16.msra.mxu0 %v4014_v1  ;;  %v4042_v1 = vld [vmem:[#allocation2 + $0x460] sm:$0xff]  }
 0xa97   :  { %3635 = vmatprep.subr.bf16.mxu0 %v4173_v0 }
 0xa9a   :  { %3636 = vmatpush3.bf16.msra.mxu0 %v4015_v6  ;;  %v4043_v6 = vld [vmem:[#allocation2 + $0x468] sm:$0xff]  }
 0xa9b   :  { %3637 = vmatprep.subr.bf16.mxu0 %v4173_v0 }
 0xa9e   :  { %3638 = vmatpush3.bf16.msra.mxu0 %v4016_v2  ;;  %v3039_v2 = vld [vmem:[%s4601_s2 + $0xf] sm:$0x1] }
 0xa9f   :  { %3639 = vmatprep.subr.bf16.mxu0 %v4173_v0 }
 0xaa2   :  { %3640 = vmatpush3.bf16.msra.mxu0 %v4017_v3  ;;  %v1789_v3 = vunpack.c.l.bf16 %v3039_v2 }
 0xaa3   :  { %3641 = vmatprep.subr.bf16.mxu0 %v4173_v0 }
 0xaa6   :  { %3642 = vmatpush3.bf16.msra.mxu0 %v4018_v4  ;;  %v1793_v4 = vrot.slane %v1789_v3, %v4262_v29 }
 0xaa7   :  { %3643 = vmatprep.subr.bf16.mxu0 %v4173_v0 }
 0xaaa   :  { %3644 = vmatpush3.bf16.msra.mxu0 %v4019_v5 }
 0xaab   :  { %3645 = vmatprep.subr.bf16.mxu0 %v4173_v0 }
 0xaae   :  { %3646 = vmatpush3.bf16.msra.mxu0 %v4020_v18  ;;  %v4048_v18 = vld [vmem:[#allocation2 + $0x490] sm:$0xff]  }
 0xaaf   :  { %3647 = vmatprep.subr.bf16.mxu0 %v4173_v0 }
 0xab2   :  { %3648 = vmatpush3.bf16.msra.mxu0 %v4021_v19  ;;  %v4049_v19 = vld [vmem:[#allocation2 + $0x498] sm:$0xff]  }
 0xab3   :  { %3673 = vmatprep.subr.bf16.mxu0 %v4173_v0 }
 0xb68   :  { %v1531_v10 = vpop.f32.mrb[24].mxu0 }
 0xb69   :  { %v1532_v11 = vadd.f32 %v1531_v10, %v1448_v9  ;;  %v3611_v12 = vpop.f32.mrb[25].mxu0 }
 0xb6a   :  { %v1534_v13 = vpop.f32.mrb[26].mxu0 }
 0xb6b   :  { %v1537_v14 = vmul.f32 0.2, %v1532_v11  ;;  %v3612_v15 = vpop.f32.mrb[27].mxu0 }
 0xb6c   :  { %v4045_v15 = vld [vmem:[#allocation2 + $0x478] sm:$0xff]  }
 0xb6d   :  { %v1538_v16 = vmax.f32 %v1532_v11, %v1537_v14  ;;  %v4044_v14 = vld [vmem:[#allocation2 + $0x470] sm:$0xff]  }
 0xb6f   :  { %v1539_v17 = vpack.c.bf16 %v1538_v16, %v1538_v16  ;;  %v4046_v16 = vld [vmem:[#allocation2 + $0x480] sm:$0xff]  }
 0xb71   :  { %3630 = vmatmul.mubr.bf16.vlgmr.msra.gmra.mrb[24].mxu1 %v1539_v17  ;;  %v4047_v17 = vld [vmem:[#allocation2 + $0x488] sm:$0xff]  }
 0xb72   :  { %3669 = vmatprep.mubr.msk.bf16.mxu1 %vm4174_vm0, %v4173_v0  ;;  %3654 = vmatpush3.bf16.msra.mxu1 %v4022_v20  ;;  %v4050_v20 = vld [vmem:[#allocation2 + $0x4a0] sm:$0xff]  }
 0xb73   :  { %3655 = vmatprep.subr.bf16.mxu1 %v4173_v0 }
 0xb76   :  { %3656 = vmatpush3.bf16.msra.mxu1 %v4023_v21  ;;  %v4051_v21 = vld [vmem:[#allocation2 + $0x4a8] sm:$0xff]  }
 0xb77   :  { %3657 = vmatprep.subr.bf16.mxu1 %v4173_v0 }
 0xb7a   :  { %3658 = vmatpush3.bf16.msra.mxu1 %v4024_v22  ;;  %v3048_v22 = vld [vmem:[%s4601_s2 + $0x10] sm:$0x1] }
 0xb7b   :  { %3659 = vmatprep.subr.bf16.mxu1 %v4173_v0 }
 0xb7e   :  { %3660 = vmatpush3.bf16.msra.mxu1 %v4025_v23  ;;  %v1904_v23 = vunpack.c.l.bf16 %v3048_v22 }
 0xb7f   :  { %3661 = vmatprep.subr.bf16.mxu1 %v4173_v0 }
 0xb82   :  { %3662 = vmatpush3.bf16.msra.mxu1 %v4026_v24  ;;  %v1908_v24 = vrot.slane %v1904_v23, %v4262_v29 }
 0xb83   :  { %3663 = vmatprep.subr.bf16.mxu1 %v4173_v0 }
 0xb86   :  { %3664 = vmatpush3.bf16.msra.mxu1 %v4027_v25 }
 0xb87   :  { %3665 = vmatprep.subr.bf16.mxu1 %v4173_v0 }
 0xb8a   :  { %3666 = vmatpush3.bf16.msra.mxu1 %v4028_v38  ;;  %v4056_v38 = vld [vmem:[#allocation2 + $0x4d0] sm:$0xff]  }
 0xb8b   :  { %3667 = vmatprep.subr.bf16.mxu1 %v4173_v0 }
 0xb8e   :  { %3668 = vmatpush3.bf16.msra.mxu1 %v4029_v39  ;;  %v4057_v39 = vld [vmem:[#allocation2 + $0x4d8] sm:$0xff]  }
 0xb8f   :  { %3693 = vmatprep.subr.bf16.mxu1 %v4173_v0 }
 0xc44   :  { %v1646_v30 = vpop.f32.mrb[24].mxu1 }
 0xc45   :  { %v1647_v31 = vadd.f32 %v1646_v30, %v1563_v28  ;;  %v3631_v32 = vpop.f32.mrb[25].mxu1 }
 0xc46   :  { %v1649_v33 = vpop.f32.mrb[26].mxu1 }
 0xc47   :  { %v1652_v34 = vmul.f32 0.2, %v1647_v31  ;;  %v3632_v35 = vpop.f32.mrb[27].mxu1 }
 0xc48   :  { %v4053_v35 = vld [vmem:[#allocation2 + $0x4b8] sm:$0xff]  }
 0xc49   :  { %v1653_v36 = vmax.f32 %v1647_v31, %v1652_v34  ;;  %v4052_v34 = vld [vmem:[#allocation2 + $0x4b0] sm:$0xff]  }
 0xc4b   :  { %v1654_v37 = vpack.c.bf16 %v1653_v36, %v1653_v36  ;;  %v4054_v36 = vld [vmem:[#allocation2 + $0x4c0] sm:$0xff]  }
 0xc4d   :  { %3650 = vmatmul.mubr.bf16.vlgmr.msra.gmra.mrb[28].mxu0 %v1654_v37  ;;  %v4055_v37 = vld [vmem:[#allocation2 + $0x4c8] sm:$0xff]  }
 0xc4e   :  { %3689 = vmatprep.mubr.msk.bf16.mxu0 %vm4174_vm0, %v4173_v0  ;;  %3674 = vmatpush3.bf16.msra.mxu0 %v4030_v40  ;;  %v4058_v40 = vld [vmem:[#allocation2 + $0x4e0] sm:$0xff]  }
 0xc4f   :  { %3675 = vmatprep.subr.bf16.mxu0 %v4173_v0 }
 0xc52   :  { %3676 = vmatpush3.bf16.msra.mxu0 %v4031_v41  ;;  %v4059_v41 = vld [vmem:[#allocation2 + $0x4e8] sm:$0xff]  }
 0xc53   :  { %3677 = vmatprep.subr.bf16.mxu0 %v4173_v0 }
 0xc56   :  { %3678 = vmatpush3.bf16.msra.mxu0 %v4032_v42  ;;  %v3057_v42 = vld [vmem:[%s4601_s2 + $0x11] sm:$0x1] }
 0xc57   :  { %3679 = vmatprep.subr.bf16.mxu0 %v4173_v0 }
 0xc5a   :  { %3680 = vmatpush3.bf16.msra.mxu0 %v4033_v43  ;;  %v2019_v43 = vunpack.c.l.bf16 %v3057_v42 }
 0xc5b   :  { %3681 = vmatprep.subr.bf16.mxu0 %v4173_v0 }
 0xc5e   :  { %3682 = vmatpush3.bf16.msra.mxu0 %v4034_v44  ;;  %v2023_v44 = vrot.slane %v2019_v43, %v4262_v29 }
 0xc5f   :  { %3683 = vmatprep.subr.bf16.mxu0 %v4173_v0 }
 0xc62   :  { %3684 = vmatpush3.bf16.msra.mxu0 %v4035_v45 }
 0xc63   :  { %3685 = vmatprep.subr.bf16.mxu0 %v4173_v0 }
 0xc66   :  { %3686 = vmatpush3.bf16.msra.mxu0 %v4036_v57  ;;  %v4066_v57 = vld [vmem:[#allocation2 + $0x520] sm:$0xff]  }
 0xc67   :  { %3687 = vmatprep.subr.bf16.mxu0 %v4173_v0 }
 0xc6a   :  { %3688 = vmatpush3.bf16.msra.mxu0 %v4037_v58  ;;  %v4067_v58 = vld [vmem:[#allocation2 + $0x528] sm:$0xff]  }
 0xc6b   :  { %3713 = vmatprep.subr.bf16.mxu0 %v4173_v0 }
 0xd20   :  { %v1761_v49 = vpop.f32.mrb[28].mxu0 }
 0xd21   :  { %v1762_v50 = vadd.f32 %v1761_v49, %v1678_v48  ;;  %v3651_v51 = vpop.f32.mrb[29].mxu0 }
 0xd22   :  { %v1764_v52 = vpop.f32.mrb[30].mxu0 }
 0xd23   :  { %v1767_v53 = vmul.f32 0.2, %v1762_v50  ;;  %v3652_v54 = vpop.f32.mrb[31].mxu0  ;;  %v4060_v52 = vld [vmem:[#allocation2 + $0x4f0] sm:$0xff]  }
 0xd24   :  { %v4062_v54 = vld [vmem:[#allocation2 + $0x500] sm:$0xff]  }
 0xd25   :  { %v1768_v55 = vmax.f32 %v1762_v50, %v1767_v53  ;;  %v4061_v53 = vld [vmem:[#allocation2 + $0x4f8] sm:$0xff]  }
 0xd27   :  { %v1769_v56 = vpack.c.bf16 %v1768_v55, %v1768_v55  ;;  %v4064_v55 = vld [vmem:[#allocation2 + $0x510] sm:$0xff]  }
 0xd29   :  { %3670 = vmatmul.mubr.bf16.vlgmr.msra.gmra.mrb[28].mxu1 %v1769_v56  ;;  %v4065_v56 = vld [vmem:[#allocation2 + $0x518] sm:$0xff]  }
 0xd2a   :  { %3709 = vmatprep.mubr.msk.bf16.mxu1 %vm4174_vm0, %v4173_v0  ;;  %3694 = vmatpush3.bf16.msra.mxu1 %v4038_v60  ;;  %v3066_v60 = vld [vmem:[%s4601_s2 + $0x12] sm:$0x1] }
 0xd2b   :  { %3695 = vmatprep.subr.bf16.mxu1 %v4173_v0 }
 0xd2e   :  { %3696 = vmatpush3.bf16.msra.mxu1 %v4039_v61  ;;  %v2133_v61 = vunpack.c.l.bf16 %v3066_v60 }
 0xd2f   :  { %3697 = vmatprep.subr.bf16.mxu1 %v4173_v0 }
 0xd32   :  { %3698 = vmatpush3.bf16.msra.mxu1 %v4040_v62  ;;  %v2137_v62 = vrot.slane %v2133_v61, %v4262_v29 }
 0xd33   :  { %3699 = vmatprep.subr.bf16.mxu1 %v4173_v0 }
 0xd36   :  { %3700 = vmatpush3.bf16.msra.mxu1 %v4041_v63 }
 0xd37   :  { %3701 = vmatprep.subr.bf16.mxu1 %v4173_v0 }
 0xd3a   :  { %3702 = vmatpush3.bf16.msra.mxu1 %v4042_v1 }
 0xd3b   :  { %3703 = vmatprep.subr.bf16.mxu1 %v4173_v0 }
 0xd3e   :  { %3704 = vmatpush3.bf16.msra.mxu1 %v4043_v6 }
 0xd3f   :  { %3705 = vmatprep.subr.bf16.mxu1 %v4173_v0 }
 0xd42   :  { %3706 = vmatpush3.bf16.msra.mxu1 %v4044_v14  ;;  %v4074_v14 = vld [vmem:[#allocation2 + $0x560] sm:$0xff]  }
 0xd43   :  { %3707 = vmatprep.subr.bf16.mxu1 %v4173_v0 }
 0xd46   :  { %3708 = vmatpush3.bf16.msra.mxu1 %v4045_v15  ;;  %v4075_v15 = vld [vmem:[#allocation2 + $0x568] sm:$0xff]  }
 0xd47   :  { %3733 = vmatprep.subr.bf16.mxu1 %v4173_v0 }
 0xdfc   :  { %v1876_v5 = vpop.f32.mrb[28].mxu1 }
 0xdfd   :  { %v1877_v7 = vadd.f32 %v1876_v5, %v1793_v4  ;;  %v3671_v8 = vpop.f32.mrb[29].mxu1 }
 0xdfe   :  { %v1879_v9 = vpop.f32.mrb[30].mxu1  ;;  %v4068_v8 = vld [vmem:[#allocation2 + $0x530] sm:$0xff]  }
 0xdff   :  { %v1882_v10 = vmul.f32 0.2, %v1877_v7  ;;  %v3672_v11 = vpop.f32.mrb[31].mxu1  ;;  %v4069_v9 = vld [vmem:[#allocation2 + $0x538] sm:$0xff]  }
 0xe00   :  { %v4071_v11 = vld [vmem:[#allocation2 + $0x548] sm:$0xff]  }
 0xe01   :  { %v1883_v12 = vmax.f32 %v1877_v7, %v1882_v10  ;;  %v4070_v10 = vld [vmem:[#allocation2 + $0x540] sm:$0xff]  }
 0xe03   :  { %v1884_v13 = vpack.c.bf16 %v1883_v12, %v1883_v12  ;;  %v4072_v12 = vld [vmem:[#allocation2 + $0x550] sm:$0xff]  }
 0xe05   :  { %3690 = vmatmul.mubr.bf16.vlgmr.msra.gmra.mrb[32].mxu0 %v1884_v13  ;;  %v4073_v13 = vld [vmem:[#allocation2 + $0x558] sm:$0xff]  }
 0xe06   :  { %3729 = vmatprep.mubr.msk.bf16.mxu0 %vm4174_vm0, %v4173_v0  ;;  %3714 = vmatpush3.bf16.msra.mxu0 %v4046_v16  ;;  %v3075_v16 = vld [vmem:[%s4601_s2 + $0x13] sm:$0x1] }
 0xe07   :  { %3715 = vmatprep.subr.bf16.mxu0 %v4173_v0 }
 0xe0a   :  { %3716 = vmatpush3.bf16.msra.mxu0 %v4047_v17  ;;  %v2248_v17 = vunpack.c.l.bf16 %v3075_v16  ;;  %v2808_v16 = vld [vmem:[#allocation5 + $0x30] sm:$0xff] }
 0xe0b   :  { %3717 = vmatprep.subr.bf16.mxu0 %v4173_v0 }
 0xe0e   :  { %3718 = vmatpush3.bf16.msra.mxu0 %v4048_v18  ;;  %v2252_v18 = vrot.slane %v2248_v17, %v4262_v29  ;;  %v2809_v17 = vld [vmem:[#allocation5 + $0x38] sm:$0xff] }
 0xe0f   :  { %3719 = vmatprep.subr.bf16.mxu0 %v4173_v0 }
 0xe12   :  { %3720 = vmatpush3.bf16.msra.mxu0 %v4049_v19 }
 0xe13   :  { %3721 = vmatprep.subr.bf16.mxu0 %v4173_v0 }
 0xe16   :  { %3722 = vmatpush3.bf16.msra.mxu0 %v4050_v20 }
 0xe17   :  { %3723 = vmatprep.subr.bf16.mxu0 %v4173_v0 }
 0xe1a   :  { %3724 = vmatpush3.bf16.msra.mxu0 %v4051_v21 }
 0xe1b   :  { %3725 = vmatprep.subr.bf16.mxu0 %v4173_v0 }
 0xe1e   :  { %3726 = vmatpush3.bf16.msra.mxu0 %v4052_v34  ;;  %v4082_v34 = vld [vmem:[#allocation2 + $0x5a0] sm:$0xff]  }
 0xe1f   :  { %3727 = vmatprep.subr.bf16.mxu0 %v4173_v0 }
 0xe22   :  { %3728 = vmatpush3.bf16.msra.mxu0 %v4053_v35  ;;  %v4083_v35 = vld [vmem:[#allocation2 + $0x5a8] sm:$0xff]  }
 0xe23   :  { %3753 = vmatprep.subr.bf16.mxu0 %v4173_v0 }
 0xed8   :  { %v1991_v25 = vpop.f32.mrb[32].mxu0 }
 0xed9   :  { %v1992_v26 = vadd.f32 %v1991_v25, %v1908_v24  ;;  %v3691_v27 = vpop.f32.mrb[33].mxu0 }
 0xeda   :  { %v1994_v28 = vpop.f32.mrb[34].mxu0  ;;  %v4076_v27 = vld [vmem:[#allocation2 + $0x570] sm:$0xff]  }
 0xedb   :  { %v1997_v30 = vmul.f32 0.2, %v1992_v26  ;;  %v3692_v31 = vpop.f32.mrb[35].mxu0  ;;  %v4077_v28 = vld [vmem:[#allocation2 + $0x578] sm:$0xff]  }
 0xedc   :  { %v4079_v31 = vld [vmem:[#allocation2 + $0x588] sm:$0xff]  }
 0xedd   :  { %v1998_v32 = vmax.f32 %v1992_v26, %v1997_v30  ;;  %v4078_v30 = vld [vmem:[#allocation2 + $0x580] sm:$0xff]  }
 0xedf   :  { %v1999_v33 = vpack.c.bf16 %v1998_v32, %v1998_v32  ;;  %v4080_v32 = vld [vmem:[#allocation2 + $0x590] sm:$0xff]  }
 0xee1   :  { %3710 = vmatmul.mubr.bf16.vlgmr.msra.gmra.mrb[32].mxu1 %v1999_v33  ;;  %v4081_v33 = vld [vmem:[#allocation2 + $0x598] sm:$0xff]  }
 0xee2   :  { %3749 = vmatprep.mubr.msk.bf16.mxu1 %vm4174_vm0, %v4173_v0  ;;  %3734 = vmatpush3.bf16.msra.mxu1 %v4054_v36  ;;  %v3084_v36 = vld [vmem:[%s4601_s2 + $0x14] sm:$0x1] }
 0xee3   :  { %3735 = vmatprep.subr.bf16.mxu1 %v4173_v0 }
 0xee6   :  { %3736 = vmatpush3.bf16.msra.mxu1 %v4055_v37  ;;  %v2363_v37 = vunpack.c.l.bf16 %v3084_v36 }
 0xee7   :  { %3737 = vmatprep.subr.bf16.mxu1 %v4173_v0 }
 0xeea   :  { %3738 = vmatpush3.bf16.msra.mxu1 %v4056_v38  ;;  %v2367_v38 = vrot.slane %v2363_v37, %v4262_v29 }
 0xeeb   :  { %3739 = vmatprep.subr.bf16.mxu1 %v4173_v0 }
 0xeee   :  { %3740 = vmatpush3.bf16.msra.mxu1 %v4057_v39 }
 0xeef   :  { %3741 = vmatprep.subr.bf16.mxu1 %v4173_v0 }
 0xef2   :  { %3742 = vmatpush3.bf16.msra.mxu1 %v4058_v40 }
 0xef3   :  { %3743 = vmatprep.subr.bf16.mxu1 %v4173_v0 }
 0xef6   :  { %3744 = vmatpush3.bf16.msra.mxu1 %v4059_v41 }
 0xef7   :  { %3745 = vmatprep.subr.bf16.mxu1 %v4173_v0 }
 0xefa   :  { %3746 = vmatpush3.bf16.msra.mxu1 %v4060_v52  ;;  %v4088_v52 = vld [vmem:[#allocation2 + $0x5d0] sm:$0xff]  }
 0xefb   :  { %3747 = vmatprep.subr.bf16.mxu1 %v4173_v0 }
 0xefe   :  { %3748 = vmatpush3.bf16.msra.mxu1 %v4061_v53  ;;  %v4089_v53 = vld [vmem:[#allocation2 + $0x5d8] sm:$0xff]  }
 0xeff   :  { %3773 = vmatprep.subr.bf16.mxu1 %v4173_v0 }
 0xfb4   :  { %v2106_v45 = vpop.f32.mrb[32].mxu1 }
 0xfb5   :  { %v2107_v46 = vadd.f32 %v2106_v45, %v2023_v44  ;;  %v3711_v47 = vpop.f32.mrb[33].mxu1 }
 0xfb6   :  { %v2109_v48 = vpop.f32.mrb[34].mxu1  ;;  %v4084_v47 = vld [vmem:[#allocation2 + $0x5b0] sm:$0xff]  }
 0xfb7   :  { %v4516_v49 = vadd.f32 %v2107_v46, %v4427_v59  ;;  %v3712_v50 = vpop.f32.mrb[35].mxu1  ;;  %v4063_v59 = vld [vmem:[#allocation2 + $0x508] sm:$0xff]   ;;  %v4085_v48 = vld [vmem:[#allocation2 + $0x5b8] sm:$0xff]  }
 0xfb8   :  { %v4086_v50 = vld [vmem:[#allocation2 + $0x5c0] sm:$0xff]  }
 0xfb9   :  { %v2113_v51 = vpack.c.bf16 %v4516_v49, %v4516_v49 }
 0xfbb   :  { %3730 = vmatmul.mubr.bf16.vlgmr.msra.gmra.mrb[36].mxu0 %v2113_v51  ;;  %v4087_v51 = vld [vmem:[#allocation2 + $0x5c8] sm:$0xff]  }
 0xfbc   :  { %3769 = vmatprep.mubr.msk.bf16.mxu0 %vm4174_vm0, %v4173_v0  ;;  %3754 = vmatpush3.bf16.msra.mxu0 %v4062_v54  ;;  %v4090_v54 = vld [vmem:[#allocation2 + $0x5e0] sm:$0xff]  }
 0xfbd   :  { %3755 = vmatprep.subr.bf16.mxu0 %v4173_v0 }
 0xfc0   :  { %3756 = vmatpush3.bf16.msra.mxu0 %v4063_v59  ;;  %v4091_v59 = vld [vmem:[#allocation2 + $0x5e8] sm:$0xff]  }
 0xfc1   :  { %3757 = vmatprep.subr.bf16.mxu0 %v4173_v0 }
 0xfc4   :  { %3758 = vmatpush3.bf16.msra.mxu0 %v4064_v55  ;;  %v3093_v55 = vld [vmem:[%s4601_s2 + $0x15] sm:$0x1] }
 0xfc5   :  { %3759 = vmatprep.subr.bf16.mxu0 %v4173_v0 }
 0xfc8   :  { %3760 = vmatpush3.bf16.msra.mxu0 %v4065_v56  ;;  %v2478_v56 = vunpack.c.l.bf16 %v3093_v55 }
 0xfc9   :  { %3761 = vmatprep.subr.bf16.mxu0 %v4173_v0 }
 0xfcc   :  { %3762 = vmatpush3.bf16.msra.mxu0 %v4066_v57  ;;  %v2482_v57 = vrot.slane %v2478_v56, %v4262_v29 }
 0xfcd   :  { %3763 = vmatprep.subr.bf16.mxu0 %v4173_v0 }
 0xfd0   :  { %3764 = vmatpush3.bf16.msra.mxu0 %v4067_v58 }
 0xfd1   :  { %3765 = vmatprep.subr.bf16.mxu0 %v4173_v0 }
 0xfd4   :  { %3766 = vmatpush3.bf16.msra.mxu0 %v4068_v8  ;;  %v2804_v8 = vld [vmem:[#allocation5 + $0x10] sm:$0xff] }
 0xfd5   :  { %3767 = vmatprep.subr.bf16.mxu0 %v4173_v0 }
 0xfd8   :  { %3768 = vmatpush3.bf16.msra.mxu0 %v4069_v9  ;;  %v4175_v9 = vmov 0.0|0.0  }
 0xfd9   :  { %3793 = vmatprep.subr.bf16.mxu0 %v4173_v0 }
0x108e   :  { %v2220_v63 = vpop.f32.mrb[36].mxu0 }
0x108f   :  { %v2221_v1 = vadd.f32 %v2220_v63, %v2137_v62  ;;  %v3731_v6 = vpop.f32.mrb[37].mxu0 }
0x1090   :  { %v2223_v2 = vpop.f32.mrb[38].mxu0 }
0x1091   :  { %v2226_v3 = vmul.f32 0.2, %v2221_v1  ;;  %v3732_v4 = vpop.f32.mrb[39].mxu0 }
0x1092   :  { %v4093_v4 = vld [vmem:[#allocation2 + $0x5f8] sm:$0xff]  }
0x1093   :  { %v2227_v5 = vmax.f32 %v2221_v1, %v2226_v3  ;;  %v4092_v3 = vld [vmem:[#allocation2 + $0x5f0] sm:$0xff]  }
0x1095   :  { %v2228_v7 = vpack.c.bf16 %v2227_v5, %v2227_v5  ;;  %v2802_v5 = vld [vmem:[#allocation5] sm:$0xff] }
0x1097   :  { %3750 = vmatmul.mubr.bf16.vlgmr.msra.gmra.mrb[36].mxu1 %v2228_v7  ;;  %v2803_v7 = vld [vmem:[#allocation5 + $0x8] sm:$0xff] }
0x1098   :  { %3789 = vmatprep.mubr.msk.bf16.mxu1 %vm4174_vm0, %v4173_v0  ;;  %3774 = vmatpush3.bf16.msra.mxu1 %v4070_v10  ;;  %v3869_v10 = vpack.c.bf16 %v2803_v7, %v2802_v5 }
0x1099   :  { %3775 = vmatprep.subr.bf16.mxu1 %v4173_v0 }
0x109c   :  { %3776 = vmatpush3.bf16.msra.mxu1 %v4071_v11  ;;  %v2805_v11 = vld [vmem:[#allocation5 + $0x18] sm:$0xff] }
0x109d   :  { %3777 = vmatprep.subr.bf16.mxu1 %v4173_v0 }
0x10a0   :  { %3778 = vmatpush3.bf16.msra.mxu1 %v4072_v12  ;;  %v3872_v12 = vpack.c.bf16 %v2805_v11, %v2804_v8 }
0x10a1   :  { %3779 = vmatprep.subr.bf16.mxu1 %v4173_v0 }
0x10a4   :  { %3780 = vmatpush3.bf16.msra.mxu1 %v4073_v13  ;;  %v2806_v13 = vld [vmem:[#allocation5 + $0x20] sm:$0xff] }
0x10a5   :  { %3781 = vmatprep.subr.bf16.mxu1 %v4173_v0 }
0x10a8   :  { %3782 = vmatpush3.bf16.msra.mxu1 %v4074_v14  ;;  %v2807_v14 = vld [vmem:[#allocation5 + $0x28] sm:$0xff] }
0x10a9   :  { %3783 = vmatprep.subr.bf16.mxu1 %v4173_v0 }
0x10ac   :  { %3784 = vmatpush3.bf16.msra.mxu1 %v4075_v15  ;;  %v3875_v15 = vpack.c.bf16 %v2807_v14, %v2806_v13 }
0x10ad   :  { %3785 = vmatprep.subr.bf16.mxu1 %v4173_v0 }
0x10b0   :  { %3786 = vmatpush3.bf16.msra.mxu1 %v4076_v27  ;;  %v3102_v27 = vld [vmem:[%s4601_s2 + $0x16] sm:$0x1] }
0x10b1   :  { %3787 = vmatprep.subr.bf16.mxu1 %v4173_v0 }
0x10b4   :  { %3788 = vmatpush3.bf16.msra.mxu1 %v4077_v28  ;;  %v2593_v28 = vunpack.c.l.bf16 %v3102_v27 }
0x10b5   :  { %3813 = vmatprep.subr.bf16.mxu1 %v4173_v0 }
0x116a   :  { %v2335_v19 = vpop.f32.mrb[36].mxu1 }
0x116b   :  { %v2336_v20 = vadd.f32 %v2335_v19, %v2252_v18  ;;  %v3751_v21 = vpop.f32.mrb[37].mxu1  ;;  %v2810_v18 = vld [vmem:[#allocation5 + $0x40] sm:$0xff]  ;;  %v2811_v19 = vld [vmem:[#allocation5 + $0x48] sm:$0xff] }
0x116c   :  { %v2338_v22 = vpop.f32.mrb[38].mxu1  ;;  %v2812_v21 = vld [vmem:[#allocation5 + $0x50] sm:$0xff] }
0x116d   :  { %v2341_v23 = vmul.f32 0.2, %v2336_v20  ;;  %v3752_v24 = vpop.f32.mrb[39].mxu1  ;;  %v2813_v22 = vld [vmem:[#allocation5 + $0x58] sm:$0xff] }
0x116e   :  { %v2814_v24 = vld [vmem:[#allocation5 + $0x60] sm:$0xff] }
0x116f   :  { %v2342_v25 = vmax.f32 %v2336_v20, %v2341_v23  ;;  %v3881_v20 = vpack.c.bf16 %v2811_v19, %v2810_v18  ;;  %v3884_v23 = vpack.c.bf16 %v2813_v22, %v2812_v21 }
0x1171   :  { %v2343_v26 = vpack.c.bf16 %v2342_v25, %v2342_v25  ;;  %v2815_v25 = vld [vmem:[#allocation5 + $0x68] sm:$0xff] }
0x1173   :  { %3770 = vmatmul.mubr.bf16.vlgmr.msra.gmra.mrb[40].mxu0 %v2343_v26  ;;  %v3887_v26 = vpack.c.bf16 %v2815_v25, %v2814_v24 }
0x1174   :  { %3809 = vmatprep.mubr.msk.bf16.mxu0 %vm4174_vm0, %v4173_v0  ;;  %3794 = vmatpush3.bf16.msra.mxu0 %v4078_v30  ;;  %v2597_v30 = vrot.slane %v2593_v28, %v4262_v29 }
0x1175   :  { %3795 = vmatprep.subr.bf16.mxu0 %v4173_v0 }
0x1178   :  { %3796 = vmatpush3.bf16.msra.mxu0 %v4079_v31 }
0x1179   :  { %3797 = vmatprep.subr.bf16.mxu0 %v4173_v0 }
0x117c   :  { %3798 = vmatpush3.bf16.msra.mxu0 %v4080_v32 }
0x117d   :  { %3799 = vmatprep.subr.bf16.mxu0 %v4173_v0 }
0x1180   :  { %3800 = vmatpush3.bf16.msra.mxu0 %v4081_v33 }
0x1181   :  { %3801 = vmatprep.subr.bf16.mxu0 %v4173_v0 }
0x1184   :  { %3802 = vmatpush3.bf16.msra.mxu0 %v4082_v34 }
0x1185   :  { %3803 = vmatprep.subr.bf16.mxu0 %v4173_v0 }
0x1188   :  { %3804 = vmatpush3.bf16.msra.mxu0 %v4083_v35 }
0x1189   :  { %3805 = vmatprep.subr.bf16.mxu0 %v4173_v0 }
0x118c   :  { %3806 = vmatpush3.bf16.msra.mxu0 %v4084_v47 }
0x118d   :  { %3807 = vmatprep.subr.bf16.mxu0 %v4173_v0 }
0x1190   :  { %3808 = vmatpush3.bf16.msra.mxu0 %v4085_v48 }
0x1191   :  { %3868 = vmatprep.subr.bf16.mxu0 %v4175_v9 }
0x1246   :  { %v2450_v39 = vpop.f32.mrb[40].mxu0 }
0x1247   :  { %v2451_v40 = vadd.f32 %v2450_v39, %v2367_v38  ;;  %v3771_v41 = vpop.f32.mrb[41].mxu0  ;;  %v2816_v39 = vld [vmem:[#allocation5 + $0x70] sm:$0xff] }
0x1248   :  { %v2453_v42 = vpop.f32.mrb[42].mxu0 }
0x1249   :  { %v2456_v43 = vmul.f32 0.2, %v2451_v40  ;;  %v3772_v44 = vpop.f32.mrb[43].mxu0  ;;  %v3111_v42 = vld [vmem:[%s4601_s2 + $0x17] sm:$0x1] }
0x124b   :  { %v2457_v45 = vmax.f32 %v2451_v40, %v2456_v43  ;;  %v2817_v40 = vld [vmem:[#allocation5 + $0x78] sm:$0xff]  ;;  %v2708_v43 = vunpack.c.l.bf16 %v3111_v42 }
0x124c   :  { %v3890_v41 = vpack.c.bf16 %v2817_v40, %v2816_v39 }
0x124d   :  { %v2458_v46 = vpack.c.bf16 %v2457_v45, %v2457_v45  ;;  %v2712_v44 = vrot.slane %v2708_v43, %v4262_v29 }
0x124f   :  { %3790 = vmatmul.mubr.bf16.vlgmr.msra.gmra.mrb[40].mxu1 %v2458_v46 }
0x1250   :  { %3829 = vmatprep.mubr.msk.bf16.mxu1 %vm4174_vm0, %v4173_v0  ;;  %3814 = vmatpush3.bf16.msra.mxu1 %v4086_v50 }
0x1251   :  { %3815 = vmatprep.subr.bf16.mxu1 %v4173_v0 }
0x1254   :  { %3816 = vmatpush3.bf16.msra.mxu1 %v4087_v51 }
0x1255   :  { %3817 = vmatprep.subr.bf16.mxu1 %v4173_v0 }
0x1258   :  { %3818 = vmatpush3.bf16.msra.mxu1 %v4088_v52 }
0x1259   :  { %3819 = vmatprep.subr.bf16.mxu1 %v4173_v0 }
0x125c   :  { %3820 = vmatpush3.bf16.msra.mxu1 %v4089_v53 }
0x125d   :  { %3821 = vmatprep.subr.bf16.mxu1 %v4173_v0 }
0x1260   :  { %3822 = vmatpush3.bf16.msra.mxu1 %v4090_v54 }
0x1261   :  { %3823 = vmatprep.subr.bf16.mxu1 %v4173_v0 }
0x1264   :  { %3824 = vmatpush3.bf16.msra.mxu1 %v4091_v59 }
0x1265   :  { %3825 = vmatprep.subr.bf16.mxu1 %v4173_v0 }
0x1268   :  { %3826 = vmatpush3.bf16.msra.mxu1 %v4092_v3 }
0x1269   :  { %3827 = vmatprep.subr.bf16.mxu1 %v4173_v0 }
0x126c   :  { %3828 = vmatpush3.bf16.msra.mxu1 %v4093_v4 }
0x1322   :  { %v2565_v58 = vpop.f32.mrb[40].mxu1 }
0x1323   :  { %v2566_v60 = vadd.f32 %v2565_v58, %v2482_v57  ;;  %v3791_v61 = vpop.f32.mrb[41].mxu1 }
0x1324   :  { %v2568_v62 = vpop.f32.mrb[42].mxu1 }
0x1325   :  { %v2571_v63 = vmul.f32 0.2, %v2566_v60  ;;  %v3792_v1 = vpop.f32.mrb[43].mxu1 }
0x1327   :  { %v2572_v6 = vmax.f32 %v2566_v60, %v2571_v63 }
0x1329   :  { %v2573_v2 = vpack.c.bf16 %v2572_v6, %v2572_v6 }
0x132b   :  { %3810 = vmatmul.mubr.bf16.vlgmr.msra.gmra.mrb[44].mxu0 %v2573_v2 }
0x132c   :  { %3865 = vmatprep.mubr.msk.f32.mxu0 %vm4174_vm0, %v4173_v0  ;;  %3870 = vmatpush3.bf16.msra.mxu0 %v3869_v10  ;;  %v3878_v0 = vpack.c.bf16 %v2809_v17, %v2808_v16 }
0x132d   :  { %3871 = vmatprep.subr.bf16.mxu0 %v4175_v9 }
0x1330   :  { %3873 = vmatpush3.bf16.msra.mxu0 %v3872_v12 }
0x1331   :  { %3874 = vmatprep.subr.bf16.mxu0 %v4175_v9 }
0x1334   :  { %3876 = vmatpush3.bf16.msra.mxu0 %v3875_v15 }
0x1335   :  { %3877 = vmatprep.subr.bf16.mxu0 %v4175_v9 }
0x1338   :  { %3879 = vmatpush3.bf16.msra.mxu0 %v3878_v0 }
0x1339   :  { %3880 = vmatprep.subr.bf16.mxu0 %v4175_v9 }
0x133c   :  { %3882 = vmatpush3.bf16.msra.mxu0 %v3881_v20 }
0x133d   :  { %3883 = vmatprep.subr.bf16.mxu0 %v4175_v9 }
0x1340   :  { %3885 = vmatpush3.bf16.msra.mxu0 %v3884_v23 }
0x1341   :  { %3886 = vmatprep.subr.bf16.mxu0 %v4175_v9 }
0x1344   :  { %3888 = vmatpush3.bf16.msra.mxu0 %v3887_v26 }
0x1345   :  { %3889 = vmatprep.subr.bf16.mxu0 %v4175_v9 }
0x1348   :  { %3891 = vmatpush3.bf16.msra.mxu0 %v3890_v41 }
0x13fe   :  { %v2680_v31 = vpop.f32.mrb[44].mxu0 }
0x13ff   :  { %v2681_v32 = vadd.f32 %v2680_v31, %v2597_v30  ;;  %v3811_v33 = vpop.f32.mrb[45].mxu0 }
0x1400   :  { %v2683_v34 = vpop.f32.mrb[46].mxu0 }
0x1401   :  { %v2686_v35 = vmul.f32 0.2, %v2681_v32  ;;  %v3812_v36 = vpop.f32.mrb[47].mxu0 }
0x1403   :  { %v2687_v37 = vmax.f32 %v2681_v32, %v2686_v35 }
0x1405   :  { %v2688_v38 = vpack.c.bf16 %v2687_v37, %v2687_v37 }
0x1407   :  { %3830 = vmatmul.mubr.bf16.vlgmr.msra.gmra.mrb[44].mxu1 %v2688_v38 }
0x14da   :  { %v2795_v45 = vpop.f32.mrb[44].mxu1 }
0x14db   :  { %v2796_v46 = vadd.f32 %v2795_v45, %v2712_v44  ;;  %v3831_v47 = vpop.f32.mrb[45].mxu1 }
0x14dc   :  { %v2798_v48 = vpop.f32.mrb[46].mxu1 }
0x14dd   :  { %v2801_v50 = vadd.f32 %v2796_v46, %v4516_v49  ;;  %v3832_v51 = vpop.f32.mrb[47].mxu1 }
0x14df   :  { %3866 = vmatmul.mubr.f32.vlgmr.msra.gmra.mrb[48].mxu0 %v2801_v50 }
0x15b2   :  { %v2884_v52 = vpop.f32.mrb[48].mxu0 }
0x15b3   :  { %2888 = vst [vmem:[#allocation7] sm:$0xff] %v2884_v52  ;;  %v3867_v53 = vpop.f32.mrb[49].mxu0 }
0x15b4   :  { %4150 = shalt.err (!%p4147_p6)
}
0x15b5   :  { %s4151_s14 = scalar_lea.hbm %s4603_s4, 128 }
0x15b6   :  { %p4152_p7 = scmp.ne.s32.totalorder %s4603_s4, %s4151_s14  ;;  %p4155_p8 = scmp.lt.u32.totalorder %s4151_s14, %s4603_s4 }
0x15b8   :  { %p4157_p9 = pnand %p4155_p8, %p4152_p7 }
0x15ba   :  { %4160 = shalt.err (!%p4157_p9)
}
0x15bb   :  { %2898 = dma.vmem_to_hbm [thread:$0]  %s2896_s12, 128, %s4603_s4, [#allocation4]  }
0x15bc   :  { %4165 = dma.done.wait [#allocation4], 128  }
0x15bd   :  { %4166 = vsyncadd [#allocation4], 4294967168 }
0x15be   :  { %2902 = vsyncpa [#allocation3], 1 }
0x15bf   :  { %2903 = vsyncpa [#allocation6], 1 }
0x15c0   :  { %2904 = vsyncpa [#allocation4], 1 }

</bundles_post_ra>
